<compile_context>
chip_gen: v6e
topology: v6e:2x2x1
jax: 0.10.0
libtpu: 0.0.40
codegen_flags: <defaults>
</compile_context>

<pallas_src>
import numpy as np

import jax
import jax.numpy as jnp
from jax.experimental import pallas as pl
from jax.experimental.pallas import tpu as pltpu

# ----------------------------- static dimensions --------------------------- #
K = 5                      # conv kernel size
H_PAD = 32                 # 28 + 2*2 padding for conv1
C1, C2 = 6, 16             # conv channel counts
W1_OUT = 28                # conv1 spatial size
W1L = C1 * W1_OUT          # 168 lanes: conv1 output layout (28, 6*28)
P1W = W1L - 1              # 167 lanes kept after pool1 pair-max
W2_OUT = 10                # conv2 spatial size
W2L = C2 * W2_OUT          # 160 lanes: conv2 output layout (10, 16*10)
P2W = W2L - 1              # 159 lanes kept after pool2 pair-max
FC1, FC2, FC3 = 120, 84, 10
LANES = 128                # padded FC lane width


# ------------------------------ fused kernel ------------------------------- #
def _lenet_fused_kernel(x_ref, t1_ref, b1_ref, t2_ref, b2_ref,
                        wf1_ref, bf1_ref, wf2_ref, bf2_ref, wf3_ref, bf3_ref,
                        out_ref, p1_ref, p2_ref):
    f32 = jnp.float32
    x = x_ref[0]                                            # (32, 32) padded image

    # ---- conv1 + bias + ReLU: 5 sublane-shifted MXU matmuls -> (28, 6*28) ----
    acc1 = jnp.zeros((W1_OUT, W1L), f32)
    for kh in range(K):
        acc1 += jnp.dot(x[kh:kh + W1_OUT, :], t1_ref[kh],
                        preferred_element_type=f32)
    y1 = jnp.maximum(acc1 + b1_ref[...], 0.0)               # (28, 168)

    # ---- maxpool1 2x2: W-pairs via overlapping lane slices, H-pairs per row --
    ma = jnp.maximum(y1[:, 0:P1W], y1[:, 1:P1W + 1])        # (28, 167); valid @ even offs
    for i in range(14):
        p1_ref[i:i + 1, :] = jnp.maximum(ma[2 * i:2 * i + 1, :],
                                         ma[2 * i + 1:2 * i + 2, :])

    # ---- conv2 + bias + ReLU: 5 matmuls over the pooled slab -> (10, 16*10) --
    # (even-lane selection of pool1 is folded into t2's zero rows)
    acc2 = jnp.zeros((W2_OUT, W2L), f32)
    for kh in range(K):
        acc2 += jnp.dot(p1_ref[kh:kh + W2_OUT, :], t2_ref[kh],
                        preferred_element_type=f32)
    y2 = jnp.maximum(acc2 + b2_ref[...], 0.0)               # (10, 160)

    # ---- maxpool2 2x2 ----
    mb = jnp.maximum(y2[:, 0:P2W], y2[:, 1:P2W + 1])        # (10, 159)
    for i in range(5):
        p2_ref[i:i + 1, :] = jnp.maximum(mb[2 * i:2 * i + 1, :],
                                         mb[2 * i + 1:2 * i + 2, :])

    # ---- fc1 (torch flatten order folded into wf1 packing) + fc2 + fc3 ------
    acc3 = jnp.zeros((1, LANES), f32)
    for h in range(5):
        acc3 += jnp.dot(p2_ref[h:h + 1, :], wf1_ref[h], preferred_element_type=f32)
    h1 = jnp.maximum(acc3 + bf1_ref[...], 0.0)              # (1, 128); lanes >=120 are 0
    h2 = jnp.maximum(jnp.dot(h1, wf2_ref[...], preferred_element_type=f32)
                     + bf2_ref[...], 0.0)                   # (1, 128); lanes >= 84 are 0
    h3 = jnp.dot(h2, wf3_ref[...], preferred_element_type=f32) + bf3_ref[...]
    out_ref[0] = h3                                         # (1, 128); lanes >= 10 are 0


# --------------------------- parameter preparation ------------------------- #
def init_params(key):
    # Deterministic, PyTorch-style uniform(-1/sqrt(fan_in), 1/sqrt(fan_in)).
    ks = jax.random.split(key, 10)

    def u(k, shape, fan_in):
        bound = 1.0 / jnp.sqrt(jnp.float32(fan_in))
        return jax.random.uniform(k, shape, jnp.float32, -bound, bound)

    return {
        "w1": u(ks[0], (6, 1, 5, 5), 1 * 25),   "b1": u(ks[1], (6,), 1 * 25),
        "w2": u(ks[2], (16, 6, 5, 5), 6 * 25),  "b2": u(ks[3], (16,), 6 * 25),
        "wf1": u(ks[4], (400, 120), 400),       "bf1": u(ks[5], (120,), 400),
        "wf2": u(ks[6], (120, 84), 120),        "bf2": u(ks[7], (84,), 120),
        "wf3": u(ks[8], (84, 10), 84),          "bf3": u(ks[9], (10,), 84),
    }


def prepare_params(params):
    """One-time host-side repacking of weights into the kernel's matmul layout."""
    w1 = np.asarray(params["w1"], np.float32)    # (6, 1, 5, 5)
    b1 = np.asarray(params["b1"], np.float32)
    w2 = np.asarray(params["w2"], np.float32)    # (16, 6, 5, 5)
    b2 = np.asarray(params["b2"], np.float32)
    wf1 = np.asarray(params["wf1"], np.float32)  # (400, 120)
    bf1 = np.asarray(params["bf1"], np.float32)
    wf2 = np.asarray(params["wf2"], np.float32)  # (120, 84)
    bf2 = np.asarray(params["bf2"], np.float32)
    wf3 = np.asarray(params["wf3"], np.float32)  # (84, 10)
    bf3 = np.asarray(params["bf3"], np.float32)

    # conv1: y1[ho, co*28+wo] = sum_kh (x[ho+kh, :] @ t1[kh])[co*28+wo]
    t1 = np.zeros((K, H_PAD, W1L), np.float32)
    for kh in range(K):
        for co in range(C1):
            for wo in range(W1_OUT):
                for kw in range(K):
                    t1[kh, wo + kw, co * W1_OUT + wo] = w1[co, 0, kh, kw]
    b1w = np.repeat(b1, W1_OUT)[None, :].astype(np.float32)          # (1, 168)

    # conv2: pooled activation lives at lanes ci*28 + 2*m (m = pooled col).
    t2 = np.zeros((K, P1W, W2L), np.float32)
    for kh in range(K):
        for co in range(C2):
            for ci in range(C1):
                for wo in range(W2_OUT):
                    for kw in range(K):
                        t2[kh, ci * W1_OUT + 2 * (wo + kw), co * W2_OUT + wo] = \
                            w2[co, ci, kh, kw]
    b2w = np.repeat(b2, W2_OUT)[None, :].astype(np.float32)          # (1, 160)

    # fc1 with torch's (C,H,W) flatten folded in: pooled2[co,h,w] sits at
    # row-block h, lane co*10 + 2*w.  Output padded to 128 lanes (zeros).
    wf1s = np.zeros((5, P2W, LANES), np.float32)
    for h in range(5):
        for co in range(C2):
            for w in range(5):
                wf1s[h, co * W2_OUT + 2 * w, :FC1] = wf1[co * 25 + h * 5 + w, :]
    bf1p = np.zeros((1, LANES), np.float32); bf1p[0, :FC1] = bf1
    wf2p = np.zeros((LANES, LANES), np.float32); wf2p[:FC1, :FC2] = wf2
    bf2p = np.zeros((1, LANES), np.float32); bf2p[0, :FC2] = bf2
    wf3p = np.zeros((LANES, LANES), np.float32); wf3p[:FC2, :FC3] = wf3
    bf3p = np.zeros((1, LANES), np.float32); bf3p[0, :FC3] = bf3

    packed = dict(t1=t1, b1w=b1w, t2=t2, b2w=b2w, wf1s=wf1s, bf1p=bf1p,
                  wf2p=wf2p, bf2p=bf2p, wf3p=wf3p, bf3p=bf3p)
    return {k: jnp.asarray(v) for k, v in packed.items()}


# --------------------------------- forward --------------------------------- #
def lenet_forward(packed, x_nchw):
    N = x_nchw.shape[0]
    # Only host-side prep: pad the raw input for conv1's padding=2 (single
    # tiny XLA op on the network input; all intermediates stay in VMEM).
    x = jnp.pad(x_nchw[:, 0].astype(jnp.float32), ((0, 0), (2, 2), (2, 2)))

    out = pl.pallas_call(
        _lenet_fused_kernel,
        out_shape=jax.ShapeDtypeStruct((N, 1, LANES), jnp.float32),
        grid=(N,),
        in_specs=[
            pl.BlockSpec((1, H_PAD, H_PAD), lambda n: (n, 0, 0)),   # image (per sample)
            pl.BlockSpec((K, H_PAD, W1L), lambda n: (0, 0, 0)),     # t1   (resident)
            pl.BlockSpec((1, W1L), lambda n: (0, 0)),               # b1
            pl.BlockSpec((K, P1W, W2L), lambda n: (0, 0, 0)),       # t2
            pl.BlockSpec((1, W2L), lambda n: (0, 0)),               # b2
            pl.BlockSpec((5, P2W, LANES), lambda n: (0, 0, 0)),     # wf1 (packed)
            pl.BlockSpec((1, LANES), lambda n: (0, 0)),             # bf1
            pl.BlockSpec((LANES, LANES), lambda n: (0, 0)),         # wf2 (padded)
            pl.BlockSpec((1, LANES), lambda n: (0, 0)),             # bf2
            pl.BlockSpec((LANES, LANES), lambda n: (0, 0)),         # wf3 (padded)
            pl.BlockSpec((1, LANES), lambda n: (0, 0)),             # bf3
        ],
        out_specs=pl.BlockSpec((1, 1, LANES), lambda n: (n, 0, 0)),
        scratch_shapes=[pltpu.VMEM((14, P1W), jnp.float32),         # pooled conv1
                        pltpu.VMEM((5, P2W), jnp.float32)],         # pooled conv2
        compiler_params=pltpu.CompilerParams(
            dimension_semantics=("parallel",)),
    )(x, packed["t1"], packed["b1w"], packed["t2"], packed["b2w"],
      packed["wf1s"], packed["bf1p"], packed["wf2p"], packed["bf2p"],
      packed["wf3p"], packed["bf3p"])
    return out[:, 0, :FC3]


# ---------------------------- pure-JAX reference ---------------------------- #
def lenet_reference(params, x_nchw):
    x = x_nchw.astype(jnp.float32)
    y = jax.lax.conv_general_dilated(
        x, params["w1"], (1, 1), ((2, 2), (2, 2)),
        dimension_numbers=("NCHW", "OIHW", "NCHW"),
        precision=jax.lax.Precision.HIGHEST)
    y = jax.nn.relu(y + params["b1"][None, :, None, None])
    y = y.reshape(y.shape[0], 6, 14, 2, 14, 2).max(axis=(3, 5))
    y = jax.lax.conv_general_dilated(
        y, params["w2"], (1, 1), ((0, 0), (0, 0)),
        dimension_numbers=("NCHW", "OIHW", "NCHW"),
        precision=jax.lax.Precision.HIGHEST)
    y = jax.nn.relu(y + params["b2"][None, :, None, None])
    y = y.reshape(y.shape[0], 16, 5, 2, 5, 2).max(axis=(3, 5))
    y = y.reshape(y.shape[0], 400)
    y = jax.nn.relu(y @ params["wf1"] + params["bf1"])
    y = jax.nn.relu(y @ params["wf2"] + params["bf2"])
    return y @ params["wf3"] + params["bf3"]


if __name__ == "__main__":
    key = jax.random.PRNGKey(0)
    pkey, xkey = jax.random.split(key)
    params = init_params(pkey)
    packed = prepare_params(params)
    # LeNet's fc1 (16*5*5 inputs) forces 1x28x28 images; batch kept small.
    x = jax.random.normal(xkey, (2, 1, 28, 28), jnp.float32)

    out = jax.block_until_ready(jax.jit(lenet_forward)(packed, x))
    ref = jax.block_until_ready(jax.jit(lenet_reference)(params, x))

    assert out.shape == (2, 10)
    assert bool(jnp.all(jnp.isfinite(out)))
    max_err = float(jnp.max(jnp.abs(out - ref)))
    assert max_err < 5e-2, f"kernel/reference mismatch: {max_err}"
    print("KERNEL_OK")
</pallas_src>

<mosaic_0001>
module attributes {stable_mosaic.version = 11 : i64} {
  func.func @_lenet_fused_kernel(%arg0: i32, %arg1: memref<1x32x32xf32, #tpu.memory_space<vmem>>, %arg2: memref<5x32x168xf32, #tpu.memory_space<vmem>>, %arg3: memref<1x168xf32, #tpu.memory_space<vmem>>, %arg4: memref<5x167x160xf32, #tpu.memory_space<vmem>>, %arg5: memref<1x160xf32, #tpu.memory_space<vmem>>, %arg6: memref<5x159x128xf32, #tpu.memory_space<vmem>>, %arg7: memref<1x128xf32, #tpu.memory_space<vmem>>, %arg8: memref<128x128xf32, #tpu.memory_space<vmem>>, %arg9: memref<1x128xf32, #tpu.memory_space<vmem>>, %arg10: memref<128x128xf32, #tpu.memory_space<vmem>>, %arg11: memref<1x128xf32, #tpu.memory_space<vmem>>, %arg12: memref<1x1x128xf32, #tpu.memory_space<vmem>>, %arg13: memref<14x167xf32, #tpu.memory_space<vmem>>, %arg14: memref<5x159xf32, #tpu.memory_space<vmem>>) attributes {dimension_semantics = [#tpu.dimension_semantics<parallel>], iteration_bounds = array<i64: 2>, scalar_prefetch = 0 : i64, scratch_operands = 2 : i64, tpu.core_type = #tpu.core_type<tc>, window_params = [{transform_indices = @transform_0, window_bounds = array<i64: 1, 32, 32>}, {pipeline_mode = #tpu.pipeline_mode<synchronous>, transform_indices = @transform_1, window_bounds = array<i64: 5, 32, 168>}, {pipeline_mode = #tpu.pipeline_mode<synchronous>, transform_indices = @transform_2, window_bounds = array<i64: 1, 168>}, {pipeline_mode = #tpu.pipeline_mode<synchronous>, transform_indices = @transform_3, window_bounds = array<i64: 5, 167, 160>}, {pipeline_mode = #tpu.pipeline_mode<synchronous>, transform_indices = @transform_4, window_bounds = array<i64: 1, 160>}, {pipeline_mode = #tpu.pipeline_mode<synchronous>, transform_indices = @transform_5, window_bounds = array<i64: 5, 159, 128>}, {pipeline_mode = #tpu.pipeline_mode<synchronous>, transform_indices = @transform_6, window_bounds = array<i64: 1, 128>}, {pipeline_mode = #tpu.pipeline_mode<synchronous>, transform_indices = @transform_7, window_bounds = array<i64: 128, 128>}, {pipeline_mode = #tpu.pipeline_mode<synchronous>, transform_indices = @transform_8, window_bounds = array<i64: 1, 128>}, {pipeline_mode = #tpu.pipeline_mode<synchronous>, transform_indices = @transform_9, window_bounds = array<i64: 128, 128>}, {pipeline_mode = #tpu.pipeline_mode<synchronous>, transform_indices = @transform_10, window_bounds = array<i64: 1, 128>}, {transform_indices = @transform_11, window_bounds = array<i64: 1, 1, 128>}]} {
    %c0 = arith.constant 0 : index
    %c0_0 = arith.constant 0 : index
    %c0_1 = arith.constant 0 : index
    %0 = vector.load %arg1[%c0, %c0_0, %c0_1] : memref<1x32x32xf32, #tpu.memory_space<vmem>>, vector<1x32x32xf32>
    %1 = vector.shape_cast %0 : vector<1x32x32xf32> to vector<32x32xf32>
    %cst = arith.constant 0.000000e+00 : f32
    %2 = vector.broadcast %cst : f32 to vector<28x168xf32>
    %3 = vector.extract_strided_slice %1 {offsets = [0, 0], sizes = [28, 32], strides = [1, 1]} : vector<32x32xf32> to vector<28x32xf32>
    %c0_2 = arith.constant 0 : index
    %c0_3 = arith.constant 0 : index
    %c0_4 = arith.constant 0 : index
    %4 = vector.load %arg2[%c0_2, %c0_3, %c0_4] : memref<5x32x168xf32, #tpu.memory_space<vmem>>, vector<1x32x168xf32>
    %5 = vector.shape_cast %4 : vector<1x32x168xf32> to vector<32x168xf32>
    %cst_5 = arith.constant dense<0.000000e+00> : vector<28x168xf32>
    %6 = tpu.matmul %3, %5, %cst_5 {dimension_numbers = #tpu.dot_dimension_numbers<[1], [0], [0], [1], [0, 0, 1, 1], [], []>} : vector<28x32xf32>, vector<32x168xf32>, vector<28x168xf32> -> vector<28x168xf32>
    %7 = arith.addf %2, %6 : vector<28x168xf32>
    %8 = vector.extract_strided_slice %1 {offsets = [1, 0], sizes = [28, 32], strides = [1, 1]} : vector<32x32xf32> to vector<28x32xf32>
    %c1 = arith.constant 1 : index
    %c0_6 = arith.constant 0 : index
    %c0_7 = arith.constant 0 : index
    %9 = vector.load %arg2[%c1, %c0_6, %c0_7] : memref<5x32x168xf32, #tpu.memory_space<vmem>>, vector<1x32x168xf32>
    %10 = vector.shape_cast %9 : vector<1x32x168xf32> to vector<32x168xf32>
    %cst_8 = arith.constant dense<0.000000e+00> : vector<28x168xf32>
    %11 = tpu.matmul %8, %10, %cst_8 {dimension_numbers = #tpu.dot_dimension_numbers<[1], [0], [0], [1], [0, 0, 1, 1], [], []>} : vector<28x32xf32>, vector<32x168xf32>, vector<28x168xf32> -> vector<28x168xf32>
    %12 = arith.addf %7, %11 : vector<28x168xf32>
    %13 = vector.extract_strided_slice %1 {offsets = [2, 0], sizes = [28, 32], strides = [1, 1]} : vector<32x32xf32> to vector<28x32xf32>
    %c2 = arith.constant 2 : index
    %c0_9 = arith.constant 0 : index
    %c0_10 = arith.constant 0 : index
    %14 = vector.load %arg2[%c2, %c0_9, %c0_10] : memref<5x32x168xf32, #tpu.memory_space<vmem>>, vector<1x32x168xf32>
    %15 = vector.shape_cast %14 : vector<1x32x168xf32> to vector<32x168xf32>
    %cst_11 = arith.constant dense<0.000000e+00> : vector<28x168xf32>
    %16 = tpu.matmul %13, %15, %cst_11 {dimension_numbers = #tpu.dot_dimension_numbers<[1], [0], [0], [1], [0, 0, 1, 1], [], []>} : vector<28x32xf32>, vector<32x168xf32>, vector<28x168xf32> -> vector<28x168xf32>
    %17 = arith.addf %12, %16 : vector<28x168xf32>
    %18 = vector.extract_strided_slice %1 {offsets = [3, 0], sizes = [28, 32], strides = [1, 1]} : vector<32x32xf32> to vector<28x32xf32>
    %c3 = arith.constant 3 : index
    %c0_12 = arith.constant 0 : index
    %c0_13 = arith.constant 0 : index
    %19 = vector.load %arg2[%c3, %c0_12, %c0_13] : memref<5x32x168xf32, #tpu.memory_space<vmem>>, vector<1x32x168xf32>
    %20 = vector.shape_cast %19 : vector<1x32x168xf32> to vector<32x168xf32>
    %cst_14 = arith.constant dense<0.000000e+00> : vector<28x168xf32>
    %21 = tpu.matmul %18, %20, %cst_14 {dimension_numbers = #tpu.dot_dimension_numbers<[1], [0], [0], [1], [0, 0, 1, 1], [], []>} : vector<28x32xf32>, vector<32x168xf32>, vector<28x168xf32> -> vector<28x168xf32>
    %22 = arith.addf %17, %21 : vector<28x168xf32>
    %23 = vector.extract_strided_slice %1 {offsets = [4, 0], sizes = [28, 32], strides = [1, 1]} : vector<32x32xf32> to vector<28x32xf32>
    %c4 = arith.constant 4 : index
    %c0_15 = arith.constant 0 : index
    %c0_16 = arith.constant 0 : index
    %24 = vector.load %arg2[%c4, %c0_15, %c0_16] : memref<5x32x168xf32, #tpu.memory_space<vmem>>, vector<1x32x168xf32>
    %25 = vector.shape_cast %24 : vector<1x32x168xf32> to vector<32x168xf32>
    %cst_17 = arith.constant dense<0.000000e+00> : vector<28x168xf32>
    %26 = tpu.matmul %23, %25, %cst_17 {dimension_numbers = #tpu.dot_dimension_numbers<[1], [0], [0], [1], [0, 0, 1, 1], [], []>} : vector<28x32xf32>, vector<32x168xf32>, vector<28x168xf32> -> vector<28x168xf32>
    %27 = arith.addf %22, %26 : vector<28x168xf32>
    %c0_18 = arith.constant 0 : index
    %c0_19 = arith.constant 0 : index
    %28 = vector.load %arg3[%c0_18, %c0_19] : memref<1x168xf32, #tpu.memory_space<vmem>>, vector<1x168xf32>
    %29 = vector.broadcast %28 : vector<1x168xf32> to vector<28x168xf32>
    %30 = arith.addf %27, %29 : vector<28x168xf32>
    %cst_20 = arith.constant 0.000000e+00 : f32
    %31 = vector.broadcast %cst_20 : f32 to vector<28x168xf32>
    %32 = arith.maximumf %30, %31 : vector<28x168xf32>
    %33 = vector.extract_strided_slice %32 {offsets = [0, 0], sizes = [28, 167], strides = [1, 1]} : vector<28x168xf32> to vector<28x167xf32>
    %34 = vector.extract_strided_slice %32 {offsets = [0, 1], sizes = [28, 167], strides = [1, 1]} : vector<28x168xf32> to vector<28x167xf32>
    %35 = arith.maximumf %33, %34 : vector<28x167xf32>
    %36 = vector.extract_strided_slice %35 {offsets = [0, 0], sizes = [1, 167], strides = [1, 1]} : vector<28x167xf32> to vector<1x167xf32>
    %37 = vector.extract_strided_slice %35 {offsets = [1, 0], sizes = [1, 167], strides = [1, 1]} : vector<28x167xf32> to vector<1x167xf32>
    %38 = arith.maximumf %36, %37 : vector<1x167xf32>
    %c0_21 = arith.constant 0 : index
    %c0_22 = arith.constant 0 : index
    %39 = vector.load %arg13[%c0_21, %c0_22] : memref<14x167xf32, #tpu.memory_space<vmem>>, vector<1x167xf32>
    tpu.vector_store %arg13[%c0_21, %c0_22], %38 {strides = array<i32>} : memref<14x167xf32, #tpu.memory_space<vmem>>, vector<1x167xf32>,
    %40 = vector.extract_strided_slice %35 {offsets = [2, 0], sizes = [1, 167], strides = [1, 1]} : vector<28x167xf32> to vector<1x167xf32>
    %41 = vector.extract_strided_slice %35 {offsets = [3, 0], sizes = [1, 167], strides = [1, 1]} : vector<28x167xf32> to vector<1x167xf32>
    %42 = arith.maximumf %40, %41 : vector<1x167xf32>
    %c1_23 = arith.constant 1 : index
    %c0_24 = arith.constant 0 : index
    %43 = vector.load %arg13[%c1_23, %c0_24] : memref<14x167xf32, #tpu.memory_space<vmem>>, vector<1x167xf32>
    tpu.vector_store %arg13[%c1_23, %c0_24], %42 {strides = array<i32>} : memref<14x167xf32, #tpu.memory_space<vmem>>, vector<1x167xf32>,
    %44 = vector.extract_strided_slice %35 {offsets = [4, 0], sizes = [1, 167], strides = [1, 1]} : vector<28x167xf32> to vector<1x167xf32>
    %45 = vector.extract_strided_slice %35 {offsets = [5, 0], sizes = [1, 167], strides = [1, 1]} : vector<28x167xf32> to vector<1x167xf32>
    %46 = arith.maximumf %44, %45 : vector<1x167xf32>
    %c2_25 = arith.constant 2 : index
    %c0_26 = arith.constant 0 : index
    %47 = vector.load %arg13[%c2_25, %c0_26] : memref<14x167xf32, #tpu.memory_space<vmem>>, vector<1x167xf32>
    tpu.vector_store %arg13[%c2_25, %c0_26], %46 {strides = array<i32>} : memref<14x167xf32, #tpu.memory_space<vmem>>, vector<1x167xf32>,
    %48 = vector.extract_strided_slice %35 {offsets = [6, 0], sizes = [1, 167], strides = [1, 1]} : vector<28x167xf32> to vector<1x167xf32>
    %49 = vector.extract_strided_slice %35 {offsets = [7, 0], sizes = [1, 167], strides = [1, 1]} : vector<28x167xf32> to vector<1x167xf32>
    %50 = arith.maximumf %48, %49 : vector<1x167xf32>
    %c3_27 = arith.constant 3 : index
    %c0_28 = arith.constant 0 : index
    %51 = vector.load %arg13[%c3_27, %c0_28] : memref<14x167xf32, #tpu.memory_space<vmem>>, vector<1x167xf32>
    tpu.vector_store %arg13[%c3_27, %c0_28], %50 {strides = array<i32>} : memref<14x167xf32, #tpu.memory_space<vmem>>, vector<1x167xf32>,
    %52 = vector.extract_strided_slice %35 {offsets = [8, 0], sizes = [1, 167], strides = [1, 1]} : vector<28x167xf32> to vector<1x167xf32>
    %53 = vector.extract_strided_slice %35 {offsets = [9, 0], sizes = [1, 167], strides = [1, 1]} : vector<28x167xf32> to vector<1x167xf32>
    %54 = arith.maximumf %52, %53 : vector<1x167xf32>
    %c4_29 = arith.constant 4 : index
    %c0_30 = arith.constant 0 : index
    %55 = vector.load %arg13[%c4_29, %c0_30] : memref<14x167xf32, #tpu.memory_space<vmem>>, vector<1x167xf32>
    tpu.vector_store %arg13[%c4_29, %c0_30], %54 {strides = array<i32>} : memref<14x167xf32, #tpu.memory_space<vmem>>, vector<1x167xf32>,
    %56 = vector.extract_strided_slice %35 {offsets = [10, 0], sizes = [1, 167], strides = [1, 1]} : vector<28x167xf32> to vector<1x167xf32>
    %57 = vector.extract_strided_slice %35 {offsets = [11, 0], sizes = [1, 167], strides = [1, 1]} : vector<28x167xf32> to vector<1x167xf32>
    %58 = arith.maximumf %56, %57 : vector<1x167xf32>
    %c5 = arith.constant 5 : index
    %c0_31 = arith.constant 0 : index
    %59 = vector.load %arg13[%c5, %c0_31] : memref<14x167xf32, #tpu.memory_space<vmem>>, vector<1x167xf32>
    tpu.vector_store %arg13[%c5, %c0_31], %58 {strides = array<i32>} : memref<14x167xf32, #tpu.memory_space<vmem>>, vector<1x167xf32>,
    %60 = vector.extract_strided_slice %35 {offsets = [12, 0], sizes = [1, 167], strides = [1, 1]} : vector<28x167xf32> to vector<1x167xf32>
    %61 = vector.extract_strided_slice %35 {offsets = [13, 0], sizes = [1, 167], strides = [1, 1]} : vector<28x167xf32> to vector<1x167xf32>
    %62 = arith.maximumf %60, %61 : vector<1x167xf32>
    %c6 = arith.constant 6 : index
    %c0_32 = arith.constant 0 : index
    %63 = vector.load %arg13[%c6, %c0_32] : memref<14x167xf32, #tpu.memory_space<vmem>>, vector<1x167xf32>
    tpu.vector_store %arg13[%c6, %c0_32], %62 {strides = array<i32>} : memref<14x167xf32, #tpu.memory_space<vmem>>, vector<1x167xf32>,
    %64 = vector.extract_strided_slice %35 {offsets = [14, 0], sizes = [1, 167], strides = [1, 1]} : vector<28x167xf32> to vector<1x167xf32>
    %65 = vector.extract_strided_slice %35 {offsets = [15, 0], sizes = [1, 167], strides = [1, 1]} : vector<28x167xf32> to vector<1x167xf32>
    %66 = arith.maximumf %64, %65 : vector<1x167xf32>
    %c7 = arith.constant 7 : index
    %c0_33 = arith.constant 0 : index
    %67 = vector.load %arg13[%c7, %c0_33] : memref<14x167xf32, #tpu.memory_space<vmem>>, vector<1x167xf32>
    tpu.vector_store %arg13[%c7, %c0_33], %66 {strides = array<i32>} : memref<14x167xf32, #tpu.memory_space<vmem>>, vector<1x167xf32>,
    %68 = vector.extract_strided_slice %35 {offsets = [16, 0], sizes = [1, 167], strides = [1, 1]} : vector<28x167xf32> to vector<1x167xf32>
    %69 = vector.extract_strided_slice %35 {offsets = [17, 0], sizes = [1, 167], strides = [1, 1]} : vector<28x167xf32> to vector<1x167xf32>
    %70 = arith.maximumf %68, %69 : vector<1x167xf32>
    %c8 = arith.constant 8 : index
    %c0_34 = arith.constant 0 : index
    %71 = vector.load %arg13[%c8, %c0_34] : memref<14x167xf32, #tpu.memory_space<vmem>>, vector<1x167xf32>
    tpu.vector_store %arg13[%c8, %c0_34], %70 {strides = array<i32>} : memref<14x167xf32, #tpu.memory_space<vmem>>, vector<1x167xf32>,
    %72 = vector.extract_strided_slice %35 {offsets = [18, 0], sizes = [1, 167], strides = [1, 1]} : vector<28x167xf32> to vector<1x167xf32>
    %73 = vector.extract_strided_slice %35 {offsets = [19, 0], sizes = [1, 167], strides = [1, 1]} : vector<28x167xf32> to vector<1x167xf32>
    %74 = arith.maximumf %72, %73 : vector<1x167xf32>
    %c9 = arith.constant 9 : index
    %c0_35 = arith.constant 0 : index
    %75 = vector.load %arg13[%c9, %c0_35] : memref<14x167xf32, #tpu.memory_space<vmem>>, vector<1x167xf32>
    tpu.vector_store %arg13[%c9, %c0_35], %74 {strides = array<i32>} : memref<14x167xf32, #tpu.memory_space<vmem>>, vector<1x167xf32>,
    %76 = vector.extract_strided_slice %35 {offsets = [20, 0], sizes = [1, 167], strides = [1, 1]} : vector<28x167xf32> to vector<1x167xf32>
    %77 = vector.extract_strided_slice %35 {offsets = [21, 0], sizes = [1, 167], strides = [1, 1]} : vector<28x167xf32> to vector<1x167xf32>
    %78 = arith.maximumf %76, %77 : vector<1x167xf32>
    %c10 = arith.constant 10 : index
    %c0_36 = arith.constant 0 : index
    %79 = vector.load %arg13[%c10, %c0_36] : memref<14x167xf32, #tpu.memory_space<vmem>>, vector<1x167xf32>
    tpu.vector_store %arg13[%c10, %c0_36], %78 {strides = array<i32>} : memref<14x167xf32, #tpu.memory_space<vmem>>, vector<1x167xf32>,
    %80 = vector.extract_strided_slice %35 {offsets = [22, 0], sizes = [1, 167], strides = [1, 1]} : vector<28x167xf32> to vector<1x167xf32>
    %81 = vector.extract_strided_slice %35 {offsets = [23, 0], sizes = [1, 167], strides = [1, 1]} : vector<28x167xf32> to vector<1x167xf32>
    %82 = arith.maximumf %80, %81 : vector<1x167xf32>
    %c11 = arith.constant 11 : index
    %c0_37 = arith.constant 0 : index
    %83 = vector.load %arg13[%c11, %c0_37] : memref<14x167xf32, #tpu.memory_space<vmem>>, vector<1x167xf32>
    tpu.vector_store %arg13[%c11, %c0_37], %82 {strides = array<i32>} : memref<14x167xf32, #tpu.memory_space<vmem>>, vector<1x167xf32>,
    %84 = vector.extract_strided_slice %35 {offsets = [24, 0], sizes = [1, 167], strides = [1, 1]} : vector<28x167xf32> to vector<1x167xf32>
    %85 = vector.extract_strided_slice %35 {offsets = [25, 0], sizes = [1, 167], strides = [1, 1]} : vector<28x167xf32> to vector<1x167xf32>
    %86 = arith.maximumf %84, %85 : vector<1x167xf32>
    %c12 = arith.constant 12 : index
    %c0_38 = arith.constant 0 : index
    %87 = vector.load %arg13[%c12, %c0_38] : memref<14x167xf32, #tpu.memory_space<vmem>>, vector<1x167xf32>
    tpu.vector_store %arg13[%c12, %c0_38], %86 {strides = array<i32>} : memref<14x167xf32, #tpu.memory_space<vmem>>, vector<1x167xf32>,
    %88 = vector.extract_strided_slice %35 {offsets = [26, 0], sizes = [1, 167], strides = [1, 1]} : vector<28x167xf32> to vector<1x167xf32>
    %89 = vector.extract_strided_slice %35 {offsets = [27, 0], sizes = [1, 167], strides = [1, 1]} : vector<28x167xf32> to vector<1x167xf32>
    %90 = arith.maximumf %88, %89 : vector<1x167xf32>
    %c13 = arith.constant 13 : index
    %c0_39 = arith.constant 0 : index
    %91 = vector.load %arg13[%c13, %c0_39] : memref<14x167xf32, #tpu.memory_space<vmem>>, vector<1x167xf32>
    tpu.vector_store %arg13[%c13, %c0_39], %90 {strides = array<i32>} : memref<14x167xf32, #tpu.memory_space<vmem>>, vector<1x167xf32>,
    %cst_40 = arith.constant 0.000000e+00 : f32
    %92 = vector.broadcast %cst_40 : f32 to vector<10x160xf32>
    %c0_41 = arith.constant 0 : index
    %c0_42 = arith.constant 0 : index
    %93 = vector.load %arg13[%c0_41, %c0_42] : memref<14x167xf32, #tpu.memory_space<vmem>>, vector<10x167xf32>
    %c0_43 = arith.constant 0 : index
    %c0_44 = arith.constant 0 : index
    %c0_45 = arith.constant 0 : index
    %94 = vector.load %arg4[%c0_43, %c0_44, %c0_45] : memref<5x167x160xf32, #tpu.memory_space<vmem>>, vector<1x167x160xf32>
    %95 = vector.shape_cast %94 : vector<1x167x160xf32> to vector<167x160xf32>
    %cst_46 = arith.constant dense<0.000000e+00> : vector<10x160xf32>
    %96 = tpu.matmul %93, %95, %cst_46 {dimension_numbers = #tpu.dot_dimension_numbers<[1], [0], [0], [1], [0, 0, 1, 1], [], []>} : vector<10x167xf32>, vector<167x160xf32>, vector<10x160xf32> -> vector<10x160xf32>
    %97 = arith.addf %92, %96 : vector<10x160xf32>
    %c1_47 = arith.constant 1 : index
    %c0_48 = arith.constant 0 : index
    %98 = vector.load %arg13[%c1_47, %c0_48] : memref<14x167xf32, #tpu.memory_space<vmem>>, vector<10x167xf32>
    %c1_49 = arith.constant 1 : index
    %c0_50 = arith.constant 0 : index
    %c0_51 = arith.constant 0 : index
    %99 = vector.load %arg4[%c1_49, %c0_50, %c0_51] : memref<5x167x160xf32, #tpu.memory_space<vmem>>, vector<1x167x160xf32>
    %100 = vector.shape_cast %99 : vector<1x167x160xf32> to vector<167x160xf32>
    %cst_52 = arith.constant dense<0.000000e+00> : vector<10x160xf32>
    %101 = tpu.matmul %98, %100, %cst_52 {dimension_numbers = #tpu.dot_dimension_numbers<[1], [0], [0], [1], [0, 0, 1, 1], [], []>} : vector<10x167xf32>, vector<167x160xf32>, vector<10x160xf32> -> vector<10x160xf32>
    %102 = arith.addf %97, %101 : vector<10x160xf32>
    %c2_53 = arith.constant 2 : index
    %c0_54 = arith.constant 0 : index
    %103 = vector.load %arg13[%c2_53, %c0_54] : memref<14x167xf32, #tpu.memory_space<vmem>>, vector<10x167xf32>
    %c2_55 = arith.constant 2 : index
    %c0_56 = arith.constant 0 : index
    %c0_57 = arith.constant 0 : index
    %104 = vector.load %arg4[%c2_55, %c0_56, %c0_57] : memref<5x167x160xf32, #tpu.memory_space<vmem>>, vector<1x167x160xf32>
    %105 = vector.shape_cast %104 : vector<1x167x160xf32> to vector<167x160xf32>
    %cst_58 = arith.constant dense<0.000000e+00> : vector<10x160xf32>
    %106 = tpu.matmul %103, %105, %cst_58 {dimension_numbers = #tpu.dot_dimension_numbers<[1], [0], [0], [1], [0, 0, 1, 1], [], []>} : vector<10x167xf32>, vector<167x160xf32>, vector<10x160xf32> -> vector<10x160xf32>
    %107 = arith.addf %102, %106 : vector<10x160xf32>
    %c3_59 = arith.constant 3 : index
    %c0_60 = arith.constant 0 : index
    %108 = vector.load %arg13[%c3_59, %c0_60] : memref<14x167xf32, #tpu.memory_space<vmem>>, vector<10x167xf32>
    %c3_61 = arith.constant 3 : index
    %c0_62 = arith.constant 0 : index
    %c0_63 = arith.constant 0 : index
    %109 = vector.load %arg4[%c3_61, %c0_62, %c0_63] : memref<5x167x160xf32, #tpu.memory_space<vmem>>, vector<1x167x160xf32>
    %110 = vector.shape_cast %109 : vector<1x167x160xf32> to vector<167x160xf32>
    %cst_64 = arith.constant dense<0.000000e+00> : vector<10x160xf32>
    %111 = tpu.matmul %108, %110, %cst_64 {dimension_numbers = #tpu.dot_dimension_numbers<[1], [0], [0], [1], [0, 0, 1, 1], [], []>} : vector<10x167xf32>, vector<167x160xf32>, vector<10x160xf32> -> vector<10x160xf32>
    %112 = arith.addf %107, %111 : vector<10x160xf32>
    %c4_65 = arith.constant 4 : index
    %c0_66 = arith.constant 0 : index
    %113 = vector.load %arg13[%c4_65, %c0_66] : memref<14x167xf32, #tpu.memory_space<vmem>>, vector<10x167xf32>
    %c4_67 = arith.constant 4 : index
    %c0_68 = arith.constant 0 : index
    %c0_69 = arith.constant 0 : index
    %114 = vector.load %arg4[%c4_67, %c0_68, %c0_69] : memref<5x167x160xf32, #tpu.memory_space<vmem>>, vector<1x167x160xf32>
    %115 = vector.shape_cast %114 : vector<1x167x160xf32> to vector<167x160xf32>
    %cst_70 = arith.constant dense<0.000000e+00> : vector<10x160xf32>
    %116 = tpu.matmul %113, %115, %cst_70 {dimension_numbers = #tpu.dot_dimension_numbers<[1], [0], [0], [1], [0, 0, 1, 1], [], []>} : vector<10x167xf32>, vector<167x160xf32>, vector<10x160xf32> -> vector<10x160xf32>
    %117 = arith.addf %112, %116 : vector<10x160xf32>
    %c0_71 = arith.constant 0 : index
    %c0_72 = arith.constant 0 : index
    %118 = vector.load %arg5[%c0_71, %c0_72] : memref<1x160xf32, #tpu.memory_space<vmem>>, vector<1x160xf32>
    %119 = vector.broadcast %118 : vector<1x160xf32> to vector<10x160xf32>
    %120 = arith.addf %117, %119 : vector<10x160xf32>
    %cst_73 = arith.constant 0.000000e+00 : f32
    %121 = vector.broadcast %cst_73 : f32 to vector<10x160xf32>
    %122 = arith.maximumf %120, %121 : vector<10x160xf32>
    %123 = vector.extract_strided_slice %122 {offsets = [0, 0], sizes = [10, 159], strides = [1, 1]} : vector<10x160xf32> to vector<10x159xf32>
    %124 = vector.extract_strided_slice %122 {offsets = [0, 1], sizes = [10, 159], strides = [1, 1]} : vector<10x160xf32> to vector<10x159xf32>
    %125 = arith.maximumf %123, %124 : vector<10x159xf32>
    %126 = vector.extract_strided_slice %125 {offsets = [0, 0], sizes = [1, 159], strides = [1, 1]} : vector<10x159xf32> to vector<1x159xf32>
    %127 = vector.extract_strided_slice %125 {offsets = [1, 0], sizes = [1, 159], strides = [1, 1]} : vector<10x159xf32> to vector<1x159xf32>
    %128 = arith.maximumf %126, %127 : vector<1x159xf32>
    %c0_74 = arith.constant 0 : index
    %c0_75 = arith.constant 0 : index
    %129 = vector.load %arg14[%c0_74, %c0_75] : memref<5x159xf32, #tpu.memory_space<vmem>>, vector<1x159xf32>
    tpu.vector_store %arg14[%c0_74, %c0_75], %128 {strides = array<i32>} : memref<5x159xf32, #tpu.memory_space<vmem>>, vector<1x159xf32>,
    %130 = vector.extract_strided_slice %125 {offsets = [2, 0], sizes = [1, 159], strides = [1, 1]} : vector<10x159xf32> to vector<1x159xf32>
    %131 = vector.extract_strided_slice %125 {offsets = [3, 0], sizes = [1, 159], strides = [1, 1]} : vector<10x159xf32> to vector<1x159xf32>
    %132 = arith.maximumf %130, %131 : vector<1x159xf32>
    %c1_76 = arith.constant 1 : index
    %c0_77 = arith.constant 0 : index
    %133 = vector.load %arg14[%c1_76, %c0_77] : memref<5x159xf32, #tpu.memory_space<vmem>>, vector<1x159xf32>
    tpu.vector_store %arg14[%c1_76, %c0_77], %132 {strides = array<i32>} : memref<5x159xf32, #tpu.memory_space<vmem>>, vector<1x159xf32>,
    %134 = vector.extract_strided_slice %125 {offsets = [4, 0], sizes = [1, 159], strides = [1, 1]} : vector<10x159xf32> to vector<1x159xf32>
    %135 = vector.extract_strided_slice %125 {offsets = [5, 0], sizes = [1, 159], strides = [1, 1]} : vector<10x159xf32> to vector<1x159xf32>
    %136 = arith.maximumf %134, %135 : vector<1x159xf32>
    %c2_78 = arith.constant 2 : index
    %c0_79 = arith.constant 0 : index
    %137 = vector.load %arg14[%c2_78, %c0_79] : memref<5x159xf32, #tpu.memory_space<vmem>>, vector<1x159xf32>
    tpu.vector_store %arg14[%c2_78, %c0_79], %136 {strides = array<i32>} : memref<5x159xf32, #tpu.memory_space<vmem>>, vector<1x159xf32>,
    %138 = vector.extract_strided_slice %125 {offsets = [6, 0], sizes = [1, 159], strides = [1, 1]} : vector<10x159xf32> to vector<1x159xf32>
    %139 = vector.extract_strided_slice %125 {offsets = [7, 0], sizes = [1, 159], strides = [1, 1]} : vector<10x159xf32> to vector<1x159xf32>
    %140 = arith.maximumf %138, %139 : vector<1x159xf32>
    %c3_80 = arith.constant 3 : index
    %c0_81 = arith.constant 0 : index
    %141 = vector.load %arg14[%c3_80, %c0_81] : memref<5x159xf32, #tpu.memory_space<vmem>>, vector<1x159xf32>
    tpu.vector_store %arg14[%c3_80, %c0_81], %140 {strides = array<i32>} : memref<5x159xf32, #tpu.memory_space<vmem>>, vector<1x159xf32>,
    %142 = vector.extract_strided_slice %125 {offsets = [8, 0], sizes = [1, 159], strides = [1, 1]} : vector<10x159xf32> to vector<1x159xf32>
    %143 = vector.extract_strided_slice %125 {offsets = [9, 0], sizes = [1, 159], strides = [1, 1]} : vector<10x159xf32> to vector<1x159xf32>
    %144 = arith.maximumf %142, %143 : vector<1x159xf32>
    %c4_82 = arith.constant 4 : index
    %c0_83 = arith.constant 0 : index
    %145 = vector.load %arg14[%c4_82, %c0_83] : memref<5x159xf32, #tpu.memory_space<vmem>>, vector<1x159xf32>
    tpu.vector_store %arg14[%c4_82, %c0_83], %144 {strides = array<i32>} : memref<5x159xf32, #tpu.memory_space<vmem>>, vector<1x159xf32>,
    %cst_84 = arith.constant 0.000000e+00 : f32
    %146 = vector.broadcast %cst_84 : f32 to vector<1x128xf32>
    %c0_85 = arith.constant 0 : index
    %c0_86 = arith.constant 0 : index
    %147 = vector.load %arg14[%c0_85, %c0_86] : memref<5x159xf32, #tpu.memory_space<vmem>>, vector<1x159xf32>
    %c0_87 = arith.constant 0 : index
    %c0_88 = arith.constant 0 : index
    %c0_89 = arith.constant 0 : index
    %148 = vector.load %arg6[%c0_87, %c0_88, %c0_89] : memref<5x159x128xf32, #tpu.memory_space<vmem>>, vector<1x159x128xf32>
    %149 = vector.shape_cast %148 : vector<1x159x128xf32> to vector<159x128xf32>
    %cst_90 = arith.constant dense<0.000000e+00> : vector<1x128xf32>
    %150 = tpu.matmul %147, %149, %cst_90 {dimension_numbers = #tpu.dot_dimension_numbers<[1], [0], [0], [1], [0, 0, 1, 1], [], []>} : vector<1x159xf32>, vector<159x128xf32>, vector<1x128xf32> -> vector<1x128xf32>
    %151 = arith.addf %146, %150 : vector<1x128xf32>
    %c1_91 = arith.constant 1 : index
    %c0_92 = arith.constant 0 : index
    %152 = vector.load %arg14[%c1_91, %c0_92] : memref<5x159xf32, #tpu.memory_space<vmem>>, vector<1x159xf32>
    %c1_93 = arith.constant 1 : index
    %c0_94 = arith.constant 0 : index
    %c0_95 = arith.constant 0 : index
    %153 = vector.load %arg6[%c1_93, %c0_94, %c0_95] : memref<5x159x128xf32, #tpu.memory_space<vmem>>, vector<1x159x128xf32>
    %154 = vector.shape_cast %153 : vector<1x159x128xf32> to vector<159x128xf32>
    %cst_96 = arith.constant dense<0.000000e+00> : vector<1x128xf32>
    %155 = tpu.matmul %152, %154, %cst_96 {dimension_numbers = #tpu.dot_dimension_numbers<[1], [0], [0], [1], [0, 0, 1, 1], [], []>} : vector<1x159xf32>, vector<159x128xf32>, vector<1x128xf32> -> vector<1x128xf32>
    %156 = arith.addf %151, %155 : vector<1x128xf32>
    %c2_97 = arith.constant 2 : index
    %c0_98 = arith.constant 0 : index
    %157 = vector.load %arg14[%c2_97, %c0_98] : memref<5x159xf32, #tpu.memory_space<vmem>>, vector<1x159xf32>
    %c2_99 = arith.constant 2 : index
    %c0_100 = arith.constant 0 : index
    %c0_101 = arith.constant 0 : index
    %158 = vector.load %arg6[%c2_99, %c0_100, %c0_101] : memref<5x159x128xf32, #tpu.memory_space<vmem>>, vector<1x159x128xf32>
    %159 = vector.shape_cast %158 : vector<1x159x128xf32> to vector<159x128xf32>
    %cst_102 = arith.constant dense<0.000000e+00> : vector<1x128xf32>
    %160 = tpu.matmul %157, %159, %cst_102 {dimension_numbers = #tpu.dot_dimension_numbers<[1], [0], [0], [1], [0, 0, 1, 1], [], []>} : vector<1x159xf32>, vector<159x128xf32>, vector<1x128xf32> -> vector<1x128xf32>
    %161 = arith.addf %156, %160 : vector<1x128xf32>
    %c3_103 = arith.constant 3 : index
    %c0_104 = arith.constant 0 : index
    %162 = vector.load %arg14[%c3_103, %c0_104] : memref<5x159xf32, #tpu.memory_space<vmem>>, vector<1x159xf32>
    %c3_105 = arith.constant 3 : index
    %c0_106 = arith.constant 0 : index
    %c0_107 = arith.constant 0 : index
    %163 = vector.load %arg6[%c3_105, %c0_106, %c0_107] : memref<5x159x128xf32, #tpu.memory_space<vmem>>, vector<1x159x128xf32>
    %164 = vector.shape_cast %163 : vector<1x159x128xf32> to vector<159x128xf32>
    %cst_108 = arith.constant dense<0.000000e+00> : vector<1x128xf32>
    %165 = tpu.matmul %162, %164, %cst_108 {dimension_numbers = #tpu.dot_dimension_numbers<[1], [0], [0], [1], [0, 0, 1, 1], [], []>} : vector<1x159xf32>, vector<159x128xf32>, vector<1x128xf32> -> vector<1x128xf32>
    %166 = arith.addf %161, %165 : vector<1x128xf32>
    %c4_109 = arith.constant 4 : index
    %c0_110 = arith.constant 0 : index
    %167 = vector.load %arg14[%c4_109, %c0_110] : memref<5x159xf32, #tpu.memory_space<vmem>>, vector<1x159xf32>
    %c4_111 = arith.constant 4 : index
    %c0_112 = arith.constant 0 : index
    %c0_113 = arith.constant 0 : index
    %168 = vector.load %arg6[%c4_111, %c0_112, %c0_113] : memref<5x159x128xf32, #tpu.memory_space<vmem>>, vector<1x159x128xf32>
    %169 = vector.shape_cast %168 : vector<1x159x128xf32> to vector<159x128xf32>
    %cst_114 = arith.constant dense<0.000000e+00> : vector<1x128xf32>
    %170 = tpu.matmul %167, %169, %cst_114 {dimension_numbers = #tpu.dot_dimension_numbers<[1], [0], [0], [1], [0, 0, 1, 1], [], []>} : vector<1x159xf32>, vector<159x128xf32>, vector<1x128xf32> -> vector<1x128xf32>
    %171 = arith.addf %166, %170 : vector<1x128xf32>
    %c0_115 = arith.constant 0 : index
    %c0_116 = arith.constant 0 : index
    %172 = vector.load %arg7[%c0_115, %c0_116] : memref<1x128xf32, #tpu.memory_space<vmem>>, vector<1x128xf32>
    %173 = arith.addf %171, %172 : vector<1x128xf32>
    %cst_117 = arith.constant 0.000000e+00 : f32
    %174 = vector.broadcast %cst_117 : f32 to vector<1x128xf32>
    %175 = arith.maximumf %173, %174 : vector<1x128xf32>
    %c0_118 = arith.constant 0 : index
    %c0_119 = arith.constant 0 : index
    %176 = vector.load %arg8[%c0_118, %c0_119] : memref<128x128xf32, #tpu.memory_space<vmem>>, vector<128x128xf32>
    %cst_120 = arith.constant dense<0.000000e+00> : vector<1x128xf32>
    %177 = tpu.matmul %175, %176, %cst_120 {dimension_numbers = #tpu.dot_dimension_numbers<[1], [0], [0], [1], [0, 0, 1, 1], [], []>} : vector<1x128xf32>, vector<128x128xf32>, vector<1x128xf32> -> vector<1x128xf32>
    %c0_121 = arith.constant 0 : index
    %c0_122 = arith.constant 0 : index
    %178 = vector.load %arg9[%c0_121, %c0_122] : memref<1x128xf32, #tpu.memory_space<vmem>>, vector<1x128xf32>
    %179 = arith.addf %177, %178 : vector<1x128xf32>
    %cst_123 = arith.constant 0.000000e+00 : f32
    %180 = vector.broadcast %cst_123 : f32 to vector<1x128xf32>
    %181 = arith.maximumf %179, %180 : vector<1x128xf32>
    %c0_124 = arith.constant 0 : index
    %c0_125 = arith.constant 0 : index
    %182 = vector.load %arg10[%c0_124, %c0_125] : memref<128x128xf32, #tpu.memory_space<vmem>>, vector<128x128xf32>
    %cst_126 = arith.constant dense<0.000000e+00> : vector<1x128xf32>
    %183 = tpu.matmul %181, %182, %cst_126 {dimension_numbers = #tpu.dot_dimension_numbers<[1], [0], [0], [1], [0, 0, 1, 1], [], []>} : vector<1x128xf32>, vector<128x128xf32>, vector<1x128xf32> -> vector<1x128xf32>
    %c0_127 = arith.constant 0 : index
    %c0_128 = arith.constant 0 : index
    %184 = vector.load %arg11[%c0_127, %c0_128] : memref<1x128xf32, #tpu.memory_space<vmem>>, vector<1x128xf32>
    %185 = arith.addf %183, %184 : vector<1x128xf32>
    %c0_129 = arith.constant 0 : index
    %c0_130 = arith.constant 0 : index
    %c0_131 = arith.constant 0 : index
    %186 = vector.load %arg12[%c0_129, %c0_130, %c0_131] : memref<1x1x128xf32, #tpu.memory_space<vmem>>, vector<1x1x128xf32>
    %187 = vector.shape_cast %186 : vector<1x1x128xf32> to vector<1x128xf32>
    %188 = vector.shape_cast %185 : vector<1x128xf32> to vector<1x1x128xf32>
    tpu.vector_store %arg12[%c0_129, %c0_130, %c0_131], %188 {strides = array<i32>} : memref<1x1x128xf32, #tpu.memory_space<vmem>>, vector<1x1x128xf32>,
    return
  }
  func.func @transform_0(%arg0: i32) -> (i32, i32, i32) {
    %c0_i32 = arith.constant 0 : i32
    %c0_i32_0 = arith.constant 0 : i32
    %c0_i32_1 = arith.constant 0 : i32
    return %arg0, %c0_i32, %c0_i32_0 : i32, i32, i32
  }
  func.func @transform_1(%arg0: i32) -> (i32, i32, i32) {
    %c0_i32 = arith.constant 0 : i32
    %c0_i32_0 = arith.constant 0 : i32
    %c0_i32_1 = arith.constant 0 : i32
    %c0_i32_2 = arith.constant 0 : i32
    return %c0_i32, %c0_i32_0, %c0_i32_1 : i32, i32, i32
  }
  func.func @transform_2(%arg0: i32) -> (i32, i32) {
    %c0_i32 = arith.constant 0 : i32
    %c0_i32_0 = arith.constant 0 : i32
    %c0_i32_1 = arith.constant 0 : i32
    return %c0_i32, %c0_i32_0 : i32, i32
  }
  func.func @transform_3(%arg0: i32) -> (i32, i32, i32) {
    %c0_i32 = arith.constant 0 : i32
    %c0_i32_0 = arith.constant 0 : i32
    %c0_i32_1 = arith.constant 0 : i32
    %c0_i32_2 = arith.constant 0 : i32
    return %c0_i32, %c0_i32_0, %c0_i32_1 : i32, i32, i32
  }
  func.func @transform_4(%arg0: i32) -> (i32, i32) {
    %c0_i32 = arith.constant 0 : i32
    %c0_i32_0 = arith.constant 0 : i32
    %c0_i32_1 = arith.constant 0 : i32
    return %c0_i32, %c0_i32_0 : i32, i32
  }
  func.func @transform_5(%arg0: i32) -> (i32, i32, i32) {
    %c0_i32 = arith.constant 0 : i32
    %c0_i32_0 = arith.constant 0 : i32
    %c0_i32_1 = arith.constant 0 : i32
    %c0_i32_2 = arith.constant 0 : i32
    return %c0_i32, %c0_i32_0, %c0_i32_1 : i32, i32, i32
  }
  func.func @transform_6(%arg0: i32) -> (i32, i32) {
    %c0_i32 = arith.constant 0 : i32
    %c0_i32_0 = arith.constant 0 : i32
    %c0_i32_1 = arith.constant 0 : i32
    return %c0_i32, %c0_i32_0 : i32, i32
  }
  func.func @transform_7(%arg0: i32) -> (i32, i32) {
    %c0_i32 = arith.constant 0 : i32
    %c0_i32_0 = arith.constant 0 : i32
    %c0_i32_1 = arith.constant 0 : i32
    return %c0_i32, %c0_i32_0 : i32, i32
  }
  func.func @transform_8(%arg0: i32) -> (i32, i32) {
    %c0_i32 = arith.constant 0 : i32
    %c0_i32_0 = arith.constant 0 : i32
    %c0_i32_1 = arith.constant 0 : i32
    return %c0_i32, %c0_i32_0 : i32, i32
  }
  func.func @transform_9(%arg0: i32) -> (i32, i32) {
    %c0_i32 = arith.constant 0 : i32
    %c0_i32_0 = arith.constant 0 : i32
    %c0_i32_1 = arith.constant 0 : i32
    return %c0_i32, %c0_i32_0 : i32, i32
  }
  func.func @transform_10(%arg0: i32) -> (i32, i32) {
    %c0_i32 = arith.constant 0 : i32
    %c0_i32_0 = arith.constant 0 : i32
    %c0_i32_1 = arith.constant 0 : i32
    return %c0_i32, %c0_i32_0 : i32, i32
  }
  func.func @transform_11(%arg0: i32) -> (i32, i32, i32) {
    %c0_i32 = arith.constant 0 : i32
    %c0_i32_0 = arith.constant 0 : i32
    %c0_i32_1 = arith.constant 0 : i32
    return %arg0, %c0_i32, %c0_i32_0 : i32, i32, i32
  }
}

</mosaic_0001>

<bundles_post_ra>
// kernel: lenet_forward.1
= control target key start
LH: loop header
LB: loop body
LE: loop exit
PB: predicated region body
PF: predicated region fallthrough
CT: control target
= control target key end

     0   :  { %16 = vsyncpa [#allocation5], 0  ;;  %s5276_s0 = inlined_call_operand.vmem [shape: f32[2,32,32], index: 0, kind: input, shape index: {}]   ;;  %s5277_s1 = inlined_call_operand.vmem [shape: f32[5,32,168], index: 1, kind: input, shape index: {}]   ;;  %s5278_s2 = inlined_call_operand.vmem [shape: f32[1,168], index: 2, kind: input, shape index: {}]   ;;  %s5279_s3 = inlined_call_operand.vmem [shape: f32[5,167,160], index: 3, kind: input, shape index: {}]   ;;  %s5280_s4 = inlined_call_operand.vmem [shape: f32[1,160], index: 4, kind: input, shape index: {}]   ;;  %s5281_s5 = inlined_call_operand.vmem [shape: f32[5,159,128], index: 5, kind: input, shape index: {}]   ;;  %s5282_s6 = inlined_call_operand.vmem [shape: f32[1,128], index: 6, kind: input, shape index: {}]   ;;  %s5283_s7 = inlined_call_operand.vmem [shape: f32[128,128], index: 7, kind: input, shape index: {}]   ;;  %s5284_s8 = inlined_call_operand.vmem [shape: f32[1,128], index: 8, kind: input, shape index: {}]   ;;  %s5285_s9 = inlined_call_operand.vmem [shape: f32[128,128], index: 9, kind: input, shape index: {}]   ;;  %s5286_s10 = inlined_call_operand.vmem [shape: f32[1,128], index: 10, kind: input, shape index: {}]   ;;  %s5287_s11 = inlined_call_operand.hbm [shape: f32[2,1,128], index: 11, kind: output, shape index: {}]  }
   0x1   :  { %18 = vsyncpa [#allocation5 + $0x1], 0  ;;  %s3531_s17 = smov 0   ;;  %s3533_s18 = smov 0  }
   0x2   :  { %s3535_s19 = smov 0   ;;  %s3537_s20 = smov 0  }
   0x3 LB: > { %s3552_s21 = sadd.s32 4294967295, %s3464_s20   ;;  %s2909_s22 = sadd.s32 4294967294, %s3464_s20   ;;  %s3464_s20 = sphi %s3537_s20, %s5297_s20   ;;  %s3460_s19 = sphi %s3535_s19, %s5296_s19   ;;  %s3456_s18 = sphi %s3533_s18, %s5295_s18   ;;  %s3452_s17 = sphi %s3531_s17, %s5294_s17  }
   0x4   : > { %s3556_s23 = sadd.s32 1, %s3464_s20   ;;  %s267_s24 = sadd.s32 1, %s3460_s19 }
   0x5   : > { %s264_s25 = ssub.s32 %s3464_s20, %s3556_s23  ;;  %p277_p0 = scmp.ne.s32.totalorder %s3460_s19, %s3456_s18 }
   0x6   : > { %p265_p1 = scmp.eq.s32.totalorder %s264_s25, 0  ;;  %p278_p2 = scmp.eq.s32.totalorder %s3552_s21, 1 }
   0x7   : > { %p283_p3 = scmp.ne.s32.totalorder %s3456_s18, %s3452_s17  ;;  %p284_p4 = scmp.eq.s32.totalorder %s2909_s22, 1 }
   0x8   : > { %s3567_s26 = scalar_select %p265_p1, %s3460_s19, %s267_s24  }
   0x9   : > { %p3569_p5 = por %p278_p2, %p277_p0  ;;  %p3573_p6 = por %p284_p4, %p283_p3 }
   0xa   : > { %5288 = sst [smem:[#allocation7_spill]] %s3567_s26  ;;  %p2912_p7 = scmp.ge.s32.totalorder %s3464_s20, 1 }
   0xb   : > { %p340_p8 = scmp.lt.s32.totalorder %s3464_s20, 3 }
   0xd   : > { %p341_p9 = pnand %p2912_p7, %p340_p8 }
   0xe   : > { %p379_p10 = scmp.lt.s32.totalorder (!%p341_p9), %s3552_s21, 1  ;;  %s3245_s22 = sshll.u32 (!%p341_p9), %s3552_s21, 4 }
   0xf   : > { %344 = sbr.rel (%p341_p9) target bundleno = 1527 (0x5f7), region = 64  ;;  %s5241_s12 = scalar_lea.hbm (!%p341_p9), %s5287_s11, %s3245_s22 }
  0x14   : > { %v2922_v0 = vld [vmem:[%s5277_s1 + $0x78] sm:$0xff]  ;;  %v2921_v1 = vld [vmem:[%s5277_s1 + $0x70] sm:$0xff]  ;;  %v2920_v2 = vld [vmem:[%s5277_s1 + $0x68] sm:$0xff]  ;;  %s380_s29 = scalar_select %p379_p10, %s3552_s21, 1  ;;  %vm409_vm0 = vcmask 1046528   ;;  %vm417_vm1 = vcmask 261120  }
  0x15   : > { %3353 = vmatprep.subr.mxu1 %v2922_v0  ;;  %450 = vmatprep.subr.mxu0 %v2922_v0  ;;  %v2919_v3 = vld [vmem:[%s5277_s1 + $0x60] sm:$0xff]  ;;  %v2918_v4 = vld [vmem:[%s5277_s1 + $0x58] sm:$0xff]  ;;  %v2917_v5 = vld [vmem:[%s5277_s1 + $0x50] sm:$0xff]  ;;  %v3466_v18 = vmov 0.0   ;;  %vm621_vm2 = vcmask 1045504   ;;  %vm743_vm3 = vcmask 1044480  }
  0x16   : > { %3357 = vmatpush1.msra.mxu1 %v2921_v1  ;;  %451 = vmatpush1.msra.mxu0 %v2921_v1  ;;  %v2916_v6 = vld [vmem:[%s5277_s1 + $0x48] sm:$0xff]  ;;  %s3248_s15 = sshll.u32 %s380_s29, 5  ;;  %v2915_v7 = vld [vmem:[%s5277_s1 + $0x40] sm:$0xff]  ;;  %v395_v11 = vld [vmem:[%s5277_s1 + $0x38] sm:$0xff]  ;;  %vm865_vm4 = vcmask 1043456   ;;  %vm1030_vm5 = vcmask 1039360  }
  0x17   : > { %3354 = vmatprep.subr.mxu1 %v2920_v2  ;;  %452 = vmatprep.subr.mxu0 %v2920_v2  ;;  %s383_s26 = scalar_lea.vmem %s5276_s0, %s3248_s15  ;;  %v2938_v17 = vld [vmem:[%s5277_s1 + $0xb8] sm:$0xff]  ;;  %v394_v20 = vld [vmem:[%s5277_s1 + $0x30] sm:$0xff]  ;;  %v393_v23 = vld [vmem:[%s5277_s1 + $0x28] sm:$0xff]  ;;  %vm1367_vm7 = vcmask 318464   ;;  %vm2177_vm9 = vcmask 252928   ;;  %vm3469_vm10 = vmmov 0  }
  0x18   : > { %3358 = vmatpush1.msra.mxu1 %v2919_v3  ;;  %453 = vmatpush1.msra.mxu0 %v2919_v3  ;;  %v3608_v8 = vld [vmem:[%s383_s26] sm:$0xff]  ;;  %v3610_v9 = vld [vmem:[%s383_s26 + $0x8] sm:$0xff]  ;;  %v3612_v10 = vld [vmem:[%s383_s26 + $0x10] sm:$0xff]  ;;  %s3470_s15 = smov [#allocation4]  }
  0x19   : > { %3355 = vmatprep.subr.mxu1 %v2918_v4  ;;  %454 = vmatprep.subr.mxu0 %v2918_v4  ;;  %v410_v12 = vrot.slane %v3608_v8, 1  ;;  %v411_v13 = vrot.slane %v3610_v9, 1  ;;  %v3619_v14 = vld [vmem:[%s383_s26 + $0x18] sm:$0xff]  ;;  %v413_v15 = vrot.slane %v3612_v10, 1  ;;  %v2937_v21 = vld [vmem:[%s5277_s1 + $0xb0] sm:$0xff]  ;;  %v2936_v24 = vld [vmem:[%s5277_s1 + $0xa8] sm:$0xff] }
  0x1a   : > { %3359 = vmatpush1.msra.mxu1 %v2917_v5  ;;  %455 = vmatpush1.msra.mxu0 %v2917_v5  ;;  %v415_v16 = vrot.slane %v3619_v14, 1  ;;  %v392_v25 = vld [vmem:[%s5277_s1 + $0x20] sm:$0xff]  ;;  %v391_v26 = vld [vmem:[%s5277_s1 + $0x18] sm:$0xff]  ;;  %v390_v29 = vld [vmem:[%s5277_s1 + $0x10] sm:$0xff]  ;;  %v622_v34 = vrot.slane %v3608_v8, 2  ;;  %v623_v35 = vrot.slane %v3610_v9, 2 }
  0x1b   : > { %3356 = vmatprep.subr.mxu1 %v2916_v6  ;;  %456 = vmatprep.subr.mxu0 %v2916_v6  ;;  %v412_v19 = vsel %vm409_vm0, %v410_v12, %v411_v13  ;;  %v2935_v27 = vld [vmem:[%s5277_s1 + $0xa0] sm:$0xff]  ;;  %v414_v28 = vsel %vm409_vm0, %v411_v13, %v413_v15  ;;  %v2934_v30 = vld [vmem:[%s5277_s1 + $0x98] sm:$0xff]  ;;  %v389_v31 = vld [vmem:[%s5277_s1 + $0x8] sm:$0xff]  ;;  %v625_v41 = vrot.slane %v3612_v10, 2  ;;  %v627_v47 = vrot.slane %v3619_v14, 2  ;;  %s3467_s26 = smov 127  }
  0x1c   : > { %3360 = vmatpush1.msra.mxu1 %v2915_v7  ;;  %457 = vmatpush1.msra.mxu0 %v2915_v7  ;;  %v416_v22 = vsel %vm409_vm0, %v413_v15, %v415_v16  ;;  %v2933_v32 = vld [vmem:[%s5277_s1 + $0x90] sm:$0xff]  ;;  %v388_v33 = vld [vmem:[%s5277_s1] sm:$0xff]  ;;  %v2932_v36 = vld [vmem:[%s5277_s1 + $0x88] sm:$0xff]  ;;  %v624_v39 = vsel %vm621_vm2, %v622_v34, %v623_v35  ;;  %v744_v56 = vrot.slane %v3608_v8, 3  ;;  %v745_v57 = vrot.slane %v3610_v9, 3  ;;  %s3408_s21 = sshll.u32 %s3470_s15, 4  ;;  %s3409_s21 = int_to_ptr.vmem [resolvable:$false] %s3408_s21 }
  0x1d   : > { %490 = vmatprep.mubr.f32.mxu0 %v3466_v18  ;;  %502 = vmatprep.mubr.f32.mxu1 %v3466_v18  ;;  %v2931_v37 = vld [vmem:[%s5277_s1 + $0x80] sm:$0xff]  ;;  %v2950_v38 = vld [vmem:[%s5277_s1 + $0xf8] sm:$0xff]  ;;  %v2949_v40 = vld [vmem:[%s5277_s1 + $0xf0] sm:$0xff]  ;;  %v626_v45 = vsel %vm621_vm2, %v623_v35, %v625_v41  ;;  %v628_v51 = vsel %vm621_vm2, %v625_v41, %v627_v47  ;;  %v866_v59 = vrot.slane %v3608_v8, 4  ;;  %v867_v60 = vrot.slane %v3610_v9, 4  ;;  %s3410_s16 = scalar_lea.vmem %s3409_s21, 32 }
  0x1e   : > { %547 = vmatprep.subr.mxu1 %v395_v11  ;;  %2923 = vmatmul.mubr.msk.f32.vlgmr.msra.gmra.mxu0 %vm417_vm1, %v412_v19  ;;  %v2962_v42 = vld [vmem:[%s5277_s1 + $0x138] sm:$0xff]  ;;  %v2961_v43 = vld [vmem:[%s5277_s1 + $0x130] sm:$0xff]  ;;  %v2948_v44 = vld [vmem:[%s5277_s1 + $0xe8] sm:$0xff]  ;;  %v746_v63 = vsel %vm743_vm3, %v744_v56, %v745_v57  ;;  %v747_v0 = vrot.slane %v3612_v10, 3  ;;  %v869_v2 = vrot.slane %v3612_v10, 4  ;;  %v749_v4 = vrot.slane %v3619_v14, 3 }
  0x1f   : > { %2925 = vmatmul.mubr.msk.f32.vlgmr.msra.gmra.mxu1 %vm417_vm1, %v416_v22  ;;  %661 = vmatprep.subr.mxu0 %v2938_v17  ;;  %v2947_v46 = vld [vmem:[%s5277_s1 + $0xe0] sm:$0xff]  ;;  %v2960_v48 = vld [vmem:[%s5277_s1 + $0x128] sm:$0xff]  ;;  %v2946_v50 = vld [vmem:[%s5277_s1 + $0xd8] sm:$0xff]  ;;  %v868_v1 = vsel %vm865_vm4, %v866_v59, %v867_v60  ;;  %v871_v6 = vrot.slane %v3619_v14, 4 }
  0x20   : > { %548 = vmatpush1.msra.mxu1 %v394_v20  ;;  %662 = vmatpush1.msra.mxu0 %v2937_v21  ;;  %v2959_v49 = vld [vmem:[%s5277_s1 + $0x120] sm:$0xff]  ;;  %v2945_v52 = vld [vmem:[%s5277_s1 + $0xd0] sm:$0xff]  ;;  %v2958_v53 = vld [vmem:[%s5277_s1 + $0x118] sm:$0xff]  ;;  %v748_v3 = vsel %vm743_vm3, %v745_v57, %v747_v0  ;;  %v870_v5 = vsel %vm865_vm4, %v867_v60, %v869_v2  ;;  %v750_v7 = vsel %vm743_vm3, %v747_v0, %v749_v4 }
  0x21   : > { %549 = vmatprep.subr.mxu1 %v393_v23  ;;  %663 = vmatprep.subr.mxu0 %v2936_v24  ;;  %v2957_v54 = vld [vmem:[%s5277_s1 + $0x110] sm:$0xff]  ;;  %v2944_v55 = vld [vmem:[%s5277_s1 + $0xc8] sm:$0xff]  ;;  %v2943_v58 = vld [vmem:[%s5277_s1 + $0xc0] sm:$0xff] }
  0x22   : > { %550 = vmatpush1.msra.mxu1 %v392_v25  ;;  %496 = vmatprep.mubr.f32.mxu0 %v3466_v18  ;;  %v2956_v61 = vld [vmem:[%s5277_s1 + $0x108] sm:$0xff]  ;;  %v2955_v62 = vld [vmem:[%s5277_s1 + $0x100] sm:$0xff]  ;;  %v1293_v13 = vld [vmem:[%s5279_s3 + $0xd8] sm:$0xff] }
  0x23   : > { %508 = vmatprep.mubr.f32.mxu1 %v3466_v18  ;;  %551 = vmatprep.subr.mxu1 %v391_v26  ;;  %v1295_v11 = vld [vmem:[%s5279_s3 + $0xe8] sm:$0xff]  ;;  %v1294_v12 = vld [vmem:[%s5279_s3 + $0xe0] sm:$0xff]  ;;  %v1292_v15 = vld [vmem:[%s5279_s3 + $0xd0] sm:$0xff] }
  0x24   : > { %664 = vmatpush1.msra.mxu0 %v2935_v27  ;;  %2926 = vmatmul.mubr.msk.f32.gmra.mxu1 %vm417_vm1, %v415_v16  ;;  %v2997_v16 = vld [vmem:[%s5279_s3 + $0x240] sm:$0xff]  ;;  %v2996_v17 = vld [vmem:[%s5279_s3 + $0x238] sm:$0xff]  ;;  %v1291_v19 = vld [vmem:[%s5279_s3 + $0xc8] sm:$0xff] }
  0x25   : > { %2924 = vmatmul.mubr.msk.f32.gmra.mxu0 %vm417_vm1, %v414_v28  ;;  %552 = vmatpush1.msra.mxu1 %v390_v29  ;;  %v2995_v20 = vld [vmem:[%s5279_s3 + $0x230] sm:$0xff]  ;;  %v1290_v21 = vld [vmem:[%s5279_s3 + $0xc0] sm:$0xff]  ;;  %v1289_v22 = vld [vmem:[%s5279_s3 + $0xb8] sm:$0xff] }
  0x26   : > { %665 = vmatprep.subr.mxu0 %v2934_v30  ;;  %553 = vmatprep.subr.mxu1 %v389_v31  ;;  %v1288_v23 = vld [vmem:[%s5279_s3 + $0xb0] sm:$0xff]  ;;  %v1287_v24 = vld [vmem:[%s5279_s3 + $0xa8] sm:$0xff] }
  0x27   : > { %666 = vmatpush1.msra.mxu0 %v2933_v32  ;;  %554 = vmatpush1.msra.mxu1 %v388_v33  ;;  %v1283_v59 = vld [vmem:[%s5279_s3 + $0x88] sm:$0xff] }
  0x28   : > { %667 = vmatprep.subr.mxu0 %v2932_v36  ;;  %587 = vmatprep.mubr.f32.mxu1 %v3466_v18 }
  0x29   : > { %668 = vmatpush1.msra.mxu0 %v2931_v37  ;;  %701 = vmatprep.mubr.f32.mxu0 %v3466_v18 }
  0x2a   : > { %783 = vmatprep.subr.mxu1 %v2950_v38  ;;  %2927 = vmatmul.mubr.msk.f32.vlgmr.msra.gmra.mxu1 %vm417_vm1, %v3608_v8  ;;  %v872_v8 = vsel %vm865_vm4, %v869_v2, %v871_v6 }
  0x2b   : > { %2939 = vmatmul.mubr.msk.f32.vlgmr.msra.gmra.mxu0 %vm417_vm1, %v624_v39  ;;  %784 = vmatpush1.msra.mxu1 %v2949_v40  ;;  %v980_v39 = vlaneseq }
  0x2c   : > { %905 = vmatprep.subr.mxu0 %v2962_v42  ;;  %593 = vmatprep.mubr.f32.mxu1 %v3466_v18 }
  0x2d   : > { %906 = vmatpush1.msra.mxu0 %v2961_v43  ;;  %707 = vmatprep.mubr.f32.mxu0 %v3466_v18  ;;  %vm4168_vm6 = vcmp.lt.s32.totalorder %v980_v39, 167  ;;  %vm2062_vm8 = vcmp.lt.s32.totalorder %v980_v39, 159 }
  0x2e   : > { %785 = vmatprep.subr.mxu1 %v2948_v44  ;;  %2928 = vmatmul.mubr.msk.f32.gmra.mxu1 %vm417_vm1, %v3610_v9  ;;  %v1297_v9 = vld [vmem:[%s5279_s3 + $0xf8] sm:$0xff]  ;;  %v3838_v44 = vshrl.u32 %v980_v39, 7 }
  0x2f   : > { %2940 = vmatmul.mubr.msk.f32.gmra.mxu0 %vm417_vm1, %v626_v45  ;;  %786 = vmatpush1.msra.mxu1 %v2947_v46 }
  0x30   : > { %907 = vmatprep.subr.mxu0 %v2960_v48  ;;  %599 = vmatprep.mubr.f32.mxu1 %v3466_v18  ;;  %v2994_v48 = vld [vmem:[%s5279_s3 + $0x228] sm:$0xff]  ;;  %v3865_v57 = vsub.s32 0, %v3838_v44 }
  0x31   : > { %908 = vmatpush1.msra.mxu0 %v2959_v49  ;;  %713 = vmatprep.mubr.f32.mxu0 %v3466_v18  ;;  %v1286_v49 = vld [vmem:[%s5279_s3 + $0xa0] sm:$0xff] }
  0x32   : > { %787 = vmatprep.subr.mxu1 %v2946_v50  ;;  %2929 = vmatmul.mubr.msk.f32.gmra.mxu1 %vm417_vm1, %v3612_v10  ;;  %v1296_v10 = vld [vmem:[%s5279_s3 + $0xf0] sm:$0xff]  ;;  %v2993_v50 = vld [vmem:[%s5279_s3 + $0x220] sm:$0xff] }
  0x33   : > { %2941 = vmatmul.mubr.msk.f32.gmra.mxu0 %vm417_vm1, %v628_v51  ;;  %788 = vmatpush1.msra.mxu1 %v2945_v52  ;;  %v1285_v52 = vld [vmem:[%s5279_s3 + $0x98] sm:$0xff] }
  0x34   : > { %909 = vmatprep.subr.mxu0 %v2958_v53  ;;  %605 = vmatprep.mubr.f32.mxu1 %v3466_v18  ;;  %v2992_v53 = vld [vmem:[%s5279_s3 + $0x218] sm:$0xff] }
  0x35   : > { %910 = vmatpush1.msra.mxu0 %v2957_v54  ;;  %719 = vmatprep.mubr.f32.mxu0 %v3466_v18  ;;  %v1284_v54 = vld [vmem:[%s5279_s3 + $0x90] sm:$0xff] }
  0x36   : > { %789 = vmatprep.subr.mxu1 %v2944_v55  ;;  %2930 = vmatmul.mubr.msk.f32.gmra.mxu1 %vm417_vm1, %v3619_v14  ;;  %v2998_v14 = vld [vmem:[%s5279_s3 + $0x248] sm:$0xff] }
  0x37   : > { %2942 = vmatmul.mubr.msk.f32.gmra.mxu0 %vm417_vm1, %v627_v47  ;;  %790 = vmatpush1.msra.mxu1 %v2943_v58  ;;  %v2991_v58 = vld [vmem:[%s5279_s3 + $0x210] sm:$0xff] }
  0x38   : > { %911 = vmatprep.subr.mxu0 %v2956_v61  ;;  %823 = vmatprep.mubr.f32.mxu1 %v3466_v18  ;;  %v978_v61 = vld [vmem:[%s5278_s2] sm:$0x3] }
  0x39   : > { %912 = vmatpush1.msra.mxu0 %v2955_v62  ;;  %945 = vmatprep.mubr.f32.mxu0 %v3466_v18  ;;  %v3879_v62 = vsub.s32 1, %v3838_v44 }
  0x3a   : > { %2951 = vmatmul.mubr.msk.f32.vlgmr.msra.gmra.mxu1 %vm417_vm1, %v746_v63  ;;  %1467 = vmatprep.subr.mxu0 %v1297_v9  ;;  %v3890_v9 = vrot.slane %v978_v61, %v3865_v57 }
  0x3b   : > { %2963 = vmatmul.mubr.msk.f32.vlgmr.msra.gmra.mxu0 %vm417_vm1, %v868_v1  ;;  %829 = vmatprep.mubr.f32.mxu1 %v3466_v18 }
  0x3c   : > { %951 = vmatprep.mubr.f32.mxu0 %v3466_v18  ;;  %1468 = vmatpush1.msra.mxu0 %v1296_v10  ;;  %v2989_v10 = vld [vmem:[%s5279_s3 + $0x200] sm:$0xff] }
  0x3d   : > { %1469 = vmatprep.subr.mxu0 %v1295_v11  ;;  %1378 = vmatprep.subr.mxu1 %v2998_v14  ;;  %v1281_v11 = vld [vmem:[%s5279_s3 + $0x78] sm:$0xff]  ;;  %v3899_v14 = vrot.slane %v978_v61, %v3879_v62 }
  0x3e   : > { %2952 = vmatmul.mubr.msk.f32.gmra.mxu1 %vm417_vm1, %v748_v3  ;;  %1470 = vmatpush1.msra.mxu0 %v1294_v12  ;;  %v1273_v61 = vld [vmem:[%s5279_s3 + $0x38] sm:$0xff] }
  0x3f   : > { %2964 = vmatmul.mubr.msk.f32.gmra.mxu0 %vm417_vm1, %v870_v5  ;;  %835 = vmatprep.mubr.f32.mxu1 %v3466_v18  ;;  %v1282_v5 = vld [vmem:[%s5279_s3 + $0x80] sm:$0xff] }
  0x40   : > { %957 = vmatprep.mubr.f32.mxu0 %v3466_v18  ;;  %1379 = vmatpush1.msra.mxu1 %v2997_v16  ;;  %v1280_v16 = vld [vmem:[%s5279_s3 + $0x70] sm:$0xff] }
  0x41   : > { %1471 = vmatprep.subr.mxu0 %v1293_v13  ;;  %1380 = vmatprep.subr.mxu1 %v2996_v17 }
  0x42   : > { %2953 = vmatmul.mubr.msk.f32.gmra.mxu1 %vm417_vm1, %v750_v7  ;;  %1472 = vmatpush1.msra.mxu0 %v1292_v15  ;;  %v2988_v15 = vld [vmem:[%s5279_s3 + $0x1f8] sm:$0xff] }
  0x43   : > { %2965 = vmatmul.mubr.msk.f32.gmra.mxu0 %vm417_vm1, %v872_v8  ;;  %841 = vmatprep.mubr.f32.mxu1 %v3466_v18 }
  0x44   : > { %963 = vmatprep.mubr.f32.mxu0 %v3466_v18  ;;  %1381 = vmatpush1.msra.mxu1 %v2995_v20 }
  0x45   : > { %1473 = vmatprep.subr.mxu0 %v1291_v19  ;;  %1382 = vmatprep.subr.mxu1 %v2994_v48 }
  0x46   : > { %2954 = vmatmul.mubr.msk.f32.gmra.mxu1 %vm417_vm1, %v749_v4  ;;  %1474 = vmatpush1.msra.mxu0 %v1290_v21  ;;  %v2990_v4 = vld [vmem:[%s5279_s3 + $0x208] sm:$0xff] }
  0x47   : > { %2966 = vmatmul.mubr.msk.f32.gmra.mxu0 %vm417_vm1, %v871_v6  ;;  %1475 = vmatprep.subr.mxu0 %v1289_v22  ;;  %v2987_v22 = vld [vmem:[%s5279_s3 + $0x1f0] sm:$0xff] }
  0x48   : > { %1476 = vmatpush1.msra.mxu0 %v1288_v23  ;;  %1383 = vmatpush1.msra.mxu1 %v2993_v50  ;;  %v1279_v23 = vld [vmem:[%s5279_s3 + $0x68] sm:$0xff] }
  0x49   : > { %1477 = vmatprep.subr.mxu0 %v1287_v24  ;;  %1384 = vmatprep.subr.mxu1 %v2992_v53  ;;  %v1275_v50 = vld [vmem:[%s5279_s3 + $0x48] sm:$0xff] }
  0x4a   : > { %1478 = vmatpush1.msra.mxu0 %v1286_v49  ;;  %1385 = vmatpush1.msra.mxu1 %v2991_v58 }
  0x4b   : > { %1479 = vmatprep.subr.mxu0 %v1285_v52  ;;  %1386 = vmatprep.subr.mxu1 %v2990_v4  ;;  %v1272_v4 = vld [vmem:[%s5279_s3 + $0x30] sm:$0xff] }
  0x4c   : > { %1480 = vmatpush1.msra.mxu0 %v1284_v54  ;;  %1387 = vmatpush1.msra.mxu1 %v2989_v10  ;;  %v2982_v54 = vld [vmem:[%s5279_s3 + $0x1c8] sm:$0xff]  ;;  %v2979_v10 = vld [vmem:[%s5279_s3 + $0x1b0] sm:$0xff] }
  0x4d   : > { %1481 = vmatprep.subr.mxu0 %v1283_v59  ;;  %1388 = vmatprep.subr.mxu1 %v2988_v15  ;;  %v2978_v15 = vld [vmem:[%s5279_s3 + $0x1a8] sm:$0xff] }
  0x4e   : > { %1482 = vmatpush1.msra.mxu0 %v1282_v5  ;;  %1389 = vmatpush1.msra.mxu1 %v2987_v22  ;;  %v1269_v22 = vld [vmem:[%s5279_s3 + $0x18] sm:$0xff] }
  0x4f   : > { %1483 = vmatprep.subr.mxu0 %v1281_v11  ;;  %v1271_v11 = vld [vmem:[%s5279_s3 + $0x28] sm:$0xff] }
  0x50   : > { %1484 = vmatpush1.msra.mxu0 %v1280_v16  ;;  %v1270_v16 = vld [vmem:[%s5279_s3 + $0x20] sm:$0xff] }
  0x51   : > { %1485 = vmatprep.subr.mxu0 %v1279_v23 }
  0xde   : > { %v492_v25 = vpop.f32.mrf.mxu0 }
  0xdf   : > { %v504_v26 = vpop.f32.mrf.mxu1 }
  0xe0   : > { %v494_v27 = vpop.f32.mrf.mxu0 }
  0xe1   : > { %v3829_v28 = vpop.f32.mrf.mxu1 }
  0xe4   : > { %v3831_v29 = vpop.f32.mrf.mxu1 }
  0xe5   : > { %v498_v30 = vpop.f32.mrf.mxu0 }
  0xe6   : > { %v3833_v31 = vpop.f32.mrf.mxu1 }
  0xe7   : > { %v500_v32 = vpop.f32.mrf.mxu0 }
  0xea   : > { %v589_v33 = vpop.f32.mrf.mxu1 }
  0xeb   : > { %v703_v34 = vpop.f32.mrf.mxu0  ;;  %v590_v46 = vadd.f32 %v589_v33, %v492_v25 }
  0xec   : > { %v591_v35 = vpop.f32.mrf.mxu1 }
  0xed   : > { %v705_v36 = vpop.f32.mrf.mxu0  ;;  %v592_v55 = vadd.f32 %v591_v35, %v494_v27  ;;  %v726_v63 = vadd.f32 %v703_v34, %v590_v46  ;;  %v2986_v27 = vld [vmem:[%s5279_s3 + $0x1e8] sm:$0xff] }
  0xee   : > { %v595_v37 = vpop.f32.mrf.mxu1  ;;  %1390 = vmatprep.subr.mxu1 %v2986_v27 }
  0xef   : > { %v709_v38 = vpop.f32.mrf.mxu0  ;;  %v596_v0 = vadd.f32 %v595_v37, %v498_v30  ;;  %v727_v6 = vadd.f32 %v705_v36, %v592_v55  ;;  %v1278_v30 = vld [vmem:[%s5279_s3 + $0x60] sm:$0xff]  ;;  %v1277_v36 = vld [vmem:[%s5279_s3 + $0x58] sm:$0xff] }
  0xf0   : > { %v597_v40 = vpop.f32.mrf.mxu1  ;;  %1486 = vmatpush1.msra.mxu0 %v1278_v30  ;;  %v1274_v55 = vld [vmem:[%s5279_s3 + $0x40] sm:$0xff] }
  0xf1   : > { %v711_v41 = vpop.f32.mrf.mxu0  ;;  %v598_v2 = vadd.f32 %v597_v40, %v500_v32  ;;  %v728_v17 = vadd.f32 %v709_v38, %v596_v0  ;;  %1487 = vmatprep.subr.mxu0 %v1277_v36  ;;  %v1267_v36 = vld [vmem:[%s5279_s3 + $0x8] sm:$0xff] }
  0xf2   : > { %v601_v42 = vpop.f32.mrf.mxu1 }
  0xf3   : > { %v3835_v43 = vpop.f32.mrf.mxu0  ;;  %v602_v12 = vadd.f32 %v601_v42, %v504_v26  ;;  %v729_v24 = vadd.f32 %v711_v41, %v598_v2  ;;  %v2984_v41 = vld [vmem:[%s5279_s3 + $0x1d8] sm:$0xff]  ;;  %v1276_v42 = vld [vmem:[%s5279_s3 + $0x50] sm:$0xff] }
  0xf4   : > { %v603_v45 = vpop.f32.mrf.mxu1  ;;  %1488 = vmatpush1.msra.mxu0 %v1276_v42  ;;  %v2973_v42 = vld [vmem:[%s5279_s3 + $0x180] sm:$0xff] }
  0xf5   : > { %v3840_v47 = vpop.f32.mrf.mxu0  ;;  %v604_v25 = vadd.f32 %v603_v45, %v3829_v28  ;;  %v2985_v28 = vld [vmem:[%s5279_s3 + $0x1e0] sm:$0xff]  ;;  %v730_v37 = vadd.f32 %v3835_v43, %v602_v12  ;;  %1489 = vmatprep.subr.mxu0 %v1275_v50 }
  0xf6   : > { %v3851_v51 = vpop.f32.mrf.mxu1  ;;  %1391 = vmatpush1.msra.mxu1 %v2985_v28  ;;  %1490 = vmatpush1.msra.mxu0 %v1274_v55  ;;  %v2975_v28 = vld [vmem:[%s5279_s3 + $0x190] sm:$0xff]  ;;  %v1306_v50 = vld [vmem:[%s5279_s3 + $0x140] sm:$0x7f] }
  0xf7   : > { %v3862_v56 = vpop.f32.mrf.mxu0  ;;  %v608_v38 = vadd.f32 %v3851_v51, %v3831_v29  ;;  %1392 = vmatprep.subr.mxu1 %v2984_v41  ;;  %v2983_v29 = vld [vmem:[%s5279_s3 + $0x1d0] sm:$0xff]  ;;  %v731_v51 = vadd.f32 %v3840_v47, %v604_v25  ;;  %1491 = vmatprep.subr.mxu0 %v1273_v61  ;;  %v2976_v25 = vld [vmem:[%s5279_s3 + $0x198] sm:$0xff]  ;;  %v1266_v41 = vld [vmem:[%s5279_s3] sm:$0xff] }
  0xf8   : > { %v3873_v60 = vpop.f32.mrf.mxu1  ;;  %1393 = vmatpush1.msra.mxu1 %v2983_v29  ;;  %1492 = vmatpush1.msra.mxu0 %v1272_v4  ;;  %v2972_v29 = vld [vmem:[%s5279_s3 + $0x178] sm:$0xff]  ;;  %v2969_v55 = vld [vmem:[%s5279_s3 + $0x160] sm:$0xff]  ;;  %v1299_v4 = vld [vmem:[%s5279_s3 + $0x108] sm:$0xff] }
  0xf9   : > { %v3881_v1 = vpop.f32.mrf.mxu0  ;;  %v610_v52 = vadd.f32 %v3873_v60, %v3833_v31  ;;  %1394 = vmatprep.subr.mxu1 %v2982_v54  ;;  %v2981_v60 = vld [vmem:[%s5279_s3 + $0x1c0] sm:$0xff]  ;;  %1493 = vmatprep.subr.mxu0 %v1271_v11  ;;  %v1301_v61 = vld [vmem:[%s5279_s3 + $0x118] sm:$0xff] }
  0xfa   : > { %v825_v3 = vpop.f32.mrf.mxu1  ;;  %1395 = vmatpush1.msra.mxu1 %v2981_v60  ;;  %1494 = vmatpush1.msra.mxu0 %v1270_v16  ;;  %v2967_v60 = vld [vmem:[%s5279_s3 + $0x150] sm:$0xff]  ;;  %v3004_v11 = vld [vmem:[%s5279_s3 + $0x278] sm:$0xff] }
  0xfb   : > { %v848_v7 = vadd.f32 %v825_v3, %v726_v63  ;;  %v947_v8 = vpop.f32.mrf.mxu0  ;;  %v732_v63 = vadd.f32 %v3862_v56, %v608_v38  ;;  %v2980_v3 = vld [vmem:[%s5279_s3 + $0x1b8] sm:$0xff]  ;;  %v733_v12 = vadd.f32 %v3881_v1, %v610_v52  ;;  %1495 = vmatprep.subr.mxu0 %v1269_v22  ;;  %v2970_v52 = vld [vmem:[%s5279_s3 + $0x168] sm:$0xff] }
  0xfc   : > { %v827_v13 = vpop.f32.mrf.mxu1  ;;  %1396 = vmatprep.subr.mxu1 %v2980_v3  ;;  %v3007_v3 = vld [vmem:[%s5279_s3 + $0x290] sm:$0x7f]  ;;  %v3000_v16 = vld [vmem:[%s5279_s3 + $0x258] sm:$0xff] }
  0xfd   : > { %v970_v19 = vadd.f32 %v947_v8, %v848_v7  ;;  %v849_v20 = vadd.f32 %v827_v13, %v727_v6  ;;  %v949_v21 = vpop.f32.mrf.mxu0  ;;  %1397 = vmatpush1.msra.mxu1 %v2979_v10  ;;  %v3094_v10 = vld [vmem:[%s5279_s3 + $0x4e8] sm:$0xff] }
  0xfe   : > { %v831_v26 = vpop.f32.mrf.mxu1  ;;  %1398 = vmatprep.subr.mxu1 %v2978_v15  ;;  %v3001_v15 = vld [vmem:[%s5279_s3 + $0x260] sm:$0xff] }
  0xff   : > { %v971_v32 = vadd.f32 %v949_v21, %v849_v20  ;;  %v850_v33 = vadd.f32 %v831_v26, %v728_v17  ;;  %v953_v34 = vpop.f32.mrf.mxu0  ;;  %v3921_v35 = vadd.f32 %v3890_v9, %v970_v19  ;;  %v2977_v21 = vld [vmem:[%s5279_s3 + $0x1a0] sm:$0xff] }
 0x100   : > { %v833_v40 = vpop.f32.mrf.mxu1  ;;  %1399 = vmatpush1.msra.mxu1 %v2977_v21  ;;  %v3468_v21 = vmov 1966171168  }
 0x101   : > { %v3939_v45 = vadd.f32 %v3899_v14, %v971_v32  ;;  %v972_v46 = vadd.f32 %v953_v34, %v850_v33  ;;  %v851_v48 = vadd.f32 %v833_v40, %v729_v24  ;;  %v955_v43 = vpop.f32.mrf.mxu0  ;;  %v998_v49 = vmax.f32 %v3921_v35, 0.0  ;;  %v1268_v34 = vld [vmem:[%s5279_s3 + $0x10] sm:$0xff]  ;;  %1400 = vmatprep.subr.mxu1 %v2976_v25 }
 0x102   : > { %v837_v53 = vpop.f32.mrf.mxu1  ;;  %1496 = vmatpush1.msra.mxu0 %v1268_v34  ;;  %1401 = vmatpush1.msra.mxu1 %v2975_v28  ;;  %v1063_v22 = vunpack.c.l.s4 %v3468_v21 }
 0x103   : > { %v973_v58 = vadd.f32 %v955_v43, %v851_v48  ;;  %v852_v59 = vadd.f32 %v837_v53, %v730_v37  ;;  %1014 = vrot.lane.b32.xlu0 %v998_v49, %s3467_s26  ;;  %v959_v47 = vpop.f32.mrf.mxu0  ;;  %v3961_v31 = vadd.f32 %v3890_v9, %v972_v46  ;;  %v999_v0 = vmax.f32 %v3939_v45, 0.0  ;;  %v2974_v37 = vld [vmem:[%s5279_s3 + $0x188] sm:$0xff]  ;;  %1497 = vmatprep.subr.mxu0 %v1267_v36  ;;  %v1304_v53 = vld [vmem:[%s5279_s3 + $0x130] sm:$0xff] }
 0x104   : > { %v839_v2 = vpop.f32.mrf.mxu1  ;;  %1402 = vmatprep.subr.mxu1 %v2974_v37  ;;  %v1307_v43 = vld [vmem:[%s5279_s3 + $0x148] sm:$0x7f]  ;;  %1498 = vmatpush1.msra.mxu0 %v1266_v41 }
 0x105   : > { %v3978_v5 = vadd.f32 %v3899_v14, %v973_v58  ;;  %v853_v6 = vadd.f32 %v839_v2, %v731_v51  ;;  %v974_v7 = vadd.f32 %v959_v47, %v852_v59  ;;  %v961_v8 = vpop.f32.mrf.mxu0  ;;  %v1000_v56 = vmax.f32 %v3961_v31, 0.0  ;;  %1403 = vmatpush1.msra.mxu1 %v2973_v42  ;;  %v1305_v51 = vld [vmem:[%s5279_s3 + $0x138] sm:$0xff]  ;;  %3013 = vmatprep.subr.msk.mxu0 %vm409_vm0, %v1307_v43  ;;  %v1303_v58 = vld [vmem:[%s5279_s3 + $0x128] sm:$0xff]  ;;  %v1302_v47 = vld [vmem:[%s5279_s3 + $0x120] sm:$0xff] }
 0x106   : > { %v843_v13 = vpop.f32.mrf.mxu1  ;;  %1404 = vmatprep.subr.mxu1 %v2972_v29  ;;  %3014 = vmatpush2.msk.msra.mxu0 %vm409_vm0, %v1306_v50  ;;  %v2968_v59 = vld [vmem:[%s5279_s3 + $0x158] sm:$0xff]  ;;  %v1300_v2 = vld [vmem:[%s5279_s3 + $0x110] sm:$0xff] }
 0x107   : > { %v3995_v17 = vadd.f32 %v3890_v9, %v974_v7  ;;  %v854_v19 = vadd.f32 %v843_v13, %v732_v63  ;;  %v975_v20 = vadd.f32 %v961_v8, %v853_v6  ;;  %1016 = vrot.lane.b32.xlu0 %v999_v0, %s3467_s26  ;;  %1018 = vrot.lane.b32.xlu1 %v1000_v56, %s3467_s26  ;;  %v965_v1 = vpop.f32.mrf.mxu0  ;;  %v1001_v23 = vmax.f32 %v3978_v5, 0.0  ;;  %v3008_v63 = vld [vmem:[%s5279_s3 + $0x298] sm:$0x7f]  ;;  %v3006_v6 = vld [vmem:[%s5279_s3 + $0x288] sm:$0xff] }
 0x108   : > { %v845_v24 = vpop.f32.mrf.mxu1  ;;  %1523 = vmatprep.subr.mxu0 %v1305_v51  ;;  %v1298_v7 = vld [vmem:[%s5279_s3 + $0x100] sm:$0xff]  ;;  %v3002_v13 = vld [vmem:[%s5279_s3 + $0x268] sm:$0xff] }
 0x109   : > { %v1002_v26 = vmax.f32 %v3995_v17, 0.0  ;;  %v4015_v27 = vadd.f32 %v3899_v14, %v975_v20  ;;  %v855_v30 = vadd.f32 %v845_v24, %v733_v12  ;;  %v976_v32 = vadd.f32 %v965_v1, %v854_v19  ;;  %v967_v33 = vpop.f32.mrf.mxu0  ;;  %1524 = vmatpush2.msra.mxu0 %v1304_v53  ;;  %v3005_v8 = vld [vmem:[%s5279_s3 + $0x280] sm:$0xff]  ;;  %v3003_v12 = vld [vmem:[%s5279_s3 + $0x270] sm:$0xff]  ;;  %v3048_v20 = vld [vmem:[%s5279_s3 + $0x398] sm:$0xff] }
 0x10a   : > { %1525 = vmatprep.subr.mxu0 %v1303_v58  ;;  %v2999_v19 = vld [vmem:[%s5279_s3 + $0x250] sm:$0xff] }
 0x10b   : > { %v4030_v38 = vadd.f32 %v3890_v9, %v976_v32  ;;  %v977_v40 = vadd.f32 %v967_v33, %v855_v30  ;;  %1022 = vrot.lane.b32.xlu0 %v1002_v26, %s3467_s26  ;;  %1020 = vrot.lane.b32.xlu1 %v1001_v23, %s3467_s26  ;;  %v1003_v9 = vmax.f32 %v4015_v27, 0.0  ;;  %v1064_v33 = vunpack.c.0.s8 %v1063_v22 }
 0x10c   : > { %1526 = vmatpush2.msra.mxu0 %v1302_v47 }
 0x10d   : > { %v1004_v46 = vmax.f32 %v4030_v38, 0.0  ;;  %v4047_v48 = vadd.f32 %v3899_v14, %v977_v40  ;;  %v2971_v14 = vld [vmem:[%s5279_s3 + $0x170] sm:$0xff]  ;;  %1527 = vmatprep.subr.mxu0 %v1301_v61  ;;  %v4156_v43 = vsub.s32 %v1064_v33, %v3838_v44 }
 0x10e   : > { %1405 = vmatpush1.msra.mxu1 %v2971_v14  ;;  %1528 = vmatpush2.msra.mxu0 %v1300_v2 }
 0x10f   : > { %1026 = vrot.lane.b32.xlu0 %v1004_v46, %s3467_s26  ;;  %1024 = vrot.lane.b32.xlu1 %v1003_v9, %s3467_s26  ;;  %v1005_v54 = vmax.f32 %v4047_v48, 0.0 }
 0x110   : > { %1406 = vmatprep.subr.mxu1 %v2970_v52  ;;  %1529 = vmatprep.subr.mxu0 %v1299_v4 }
 0x111   : > { %1407 = vmatpush1.msra.mxu1 %v2969_v55  ;;  %1530 = vmatpush2.msra.mxu0 %v1298_v7 }
 0x112   : > { %1408 = vmatprep.subr.mxu1 %v2968_v59  ;;  %1763 = vmatprep.subr.mxu0 %v3094_v10 }
 0x113   : > { %1028 = vrot.lane.b32.xlu1 %v1005_v54, %s3467_s26  ;;  %1409 = vmatpush1.msra.mxu1 %v2967_v60 }
 0x114   : > { %3009 = vmatprep.subr.msk.mxu1 %vm409_vm0, %v3008_v63 }
 0x115   : > { %3010 = vmatpush2.msk.msra.mxu1 %vm409_vm0, %v3007_v3 }
 0x116   : > { %1434 = vmatprep.subr.mxu1 %v3006_v6 }
 0x117   : > { %1435 = vmatpush2.msra.mxu1 %v3005_v8 }
 0x118   : > { %1436 = vmatprep.subr.mxu1 %v3004_v11 }
 0x119   : > { %1437 = vmatpush2.msra.mxu1 %v3003_v12 }
 0x11a   : > { %1438 = vmatprep.subr.mxu1 %v3002_v13 }
 0x11b   : > { %1439 = vmatpush2.msra.mxu1 %v3001_v15 }
 0x11c   : > { %1440 = vmatprep.subr.mxu1 %v3000_v16 }
 0x11d   : > { %1441 = vmatpush2.msra.mxu1 %v2999_v19 }
 0x11e   : > { %1613 = vmatprep.subr.mxu1 %v3048_v20 }
 0x175   : > { %v1015_v1 = vpop.permute.xlu0 %1014 }
 0x179   : > { %v1017_v24 = vpop.permute.xlu0 %1016  ;;  %v1019_v25 = vpop.permute.xlu1 %1018 }
 0x17a   : > { %v1031_v30 = vsel %vm1030_vm5, %v1015_v1, %v1017_v24  ;;  %v1044_v32 = vmax.f32 %v999_v0, %v1017_v24 }
 0x17b   : > { %v1043_v34 = vmax.f32 %v998_v49, %v1031_v30 }
 0x17c   : > { %v1054_v28 = vrot.slane %v1044_v32, 1 }
 0x17d   : > { %v1053_v36 = vrot.slane %v1043_v34, 1  ;;  %v1021_v37 = vpop.permute.xlu1 %1020  ;;  %v1023_v50 = vpop.permute.xlu0 %1022 }
 0x17e   : > { %v1058_v40 = vmax.f32 %v1044_v32, %v1054_v28  ;;  %v1032_v41 = vsel %vm1030_vm5, %v1019_v25, %v1021_v37  ;;  %v1046_v42 = vmax.f32 %v1001_v23, %v1021_v37  ;;  %v3093_v37 = vld [vmem:[%s5279_s3 + $0x4e0] sm:$0xff] }
 0x17f   : > { %v1057_v29 = vmax.f32 %v1043_v34, %v1053_v36  ;;  %v1045_v45 = vmax.f32 %v1000_v56, %v1032_v41  ;;  %v3091_v41 = vld [vmem:[%s5279_s3 + $0x4d0] sm:$0xff] }
 0x180   : > { %v1115_v0 = vrot.slane %v1046_v42, 1 }
 0x181   : > { %v1061_v35 = vcombine.low %v1057_v29, %v1058_v40  ;;  %v1088_v49 = vcombine.high %v1057_v29, %v1058_v40  ;;  %v1114_v14 = vrot.slane %v1045_v45, 1  ;;  %v1025_v51 = vpop.permute.xlu1 %1024  ;;  %v1027_v60 = vpop.permute.xlu0 %1026  ;;  %v3092_v40 = vld [vmem:[%s5279_s3 + $0x4d8] sm:$0xff] }
 0x182   : > { %v1119_v52 = vmax.f32 %v1046_v42, %v1115_v0  ;;  %v1033_v53 = vsel %vm1030_vm5, %v1023_v50, %v1025_v51  ;;  %v1048_v5 = vmax.f32 %v1003_v9, %v1025_v51  ;;  %v3090_v42 = vld [vmem:[%s5279_s3 + $0x4c8] sm:$0xff]  ;;  %v3089_v50 = vld [vmem:[%s5279_s3 + $0x4c0] sm:$0xff]  ;;  %v3088_v51 = vld [vmem:[%s5279_s3 + $0x4b8] sm:$0xff] }
 0x183   : > { %v1068_v23 = vrot.slane %v1061_v35, %v4156_v43  ;;  %v1095_v44 = vrot.slane %v1088_v49, %v4156_v43  ;;  %v1118_v55 = vmax.f32 %v1045_v45, %v1114_v14  ;;  %v1047_v31 = vmax.f32 %v1002_v26, %v1033_v53 }
 0x184   : > { %v1173_v58 = vrot.slane %v1048_v5, 1 }
 0x185   : > { %v1075_v59 = vrot.slane %v1068_v23, %v4156_v43  ;;  %v1102_v47 = vrot.slane %v1095_v44, %v4156_v43  ;;  %v1122_v27 = vcombine.low %v1118_v55, %v1119_v52  ;;  %v1146_v9 = vcombine.high %v1118_v55, %v1119_v52  ;;  %v1029_v61 = vpop.permute.xlu1 %1028  ;;  %v3087_v23 = vld [vmem:[%s5279_s3 + $0x4b0] sm:$0xff] }
 0x186   : > { %v1172_v63 = vrot.slane %v1047_v31, 1  ;;  %v1177_v2 = vmax.f32 %v1048_v5, %v1173_v58  ;;  %v1034_v3 = vsel %vm1030_vm5, %v1027_v60, %v1029_v61  ;;  %v1050_v17 = vmax.f32 %v1005_v54, %v1029_v61  ;;  %v3047_v58 = vld [vmem:[%s5279_s3 + $0x390] sm:$0xff]  ;;  %v3046_v60 = vld [vmem:[%s5279_s3 + $0x388] sm:$0xff] }
 0x187   : > { %1081 = vst.msk [vmem:[#allocation2] ss:$8 sm:$0x3] %vm4168_vm6, %v1075_v59  ;;  %v1083_v26 = vcombine.high %v1075_v59, %v1075_v59  ;;  %1105 = vst.msk [vmem:[#allocation2 + $0x2] ss:$8 sm:$0x3] %vm4168_vm6, %v1102_v47  ;;  %v1107_v4 = vcombine.high %v1102_v47, %v1102_v47  ;;  %v1129_v6 = vrot.slane %v1122_v27, %v4156_v43 }
 0x188   : > { %v1153_v7 = vrot.slane %v1146_v9, %v4156_v43  ;;  %v1176_v8 = vmax.f32 %v1047_v31, %v1172_v63  ;;  %v1049_v10 = vmax.f32 %v1004_v46, %v1034_v3  ;;  %v1231_v11 = vrot.slane %v1050_v17, 1  ;;  %v3086_v59 = vld [vmem:[%s5279_s3 + $0x4a8] sm:$0xff]  ;;  %v3085_v63 = vld [vmem:[%s5279_s3 + $0x4a0] sm:$0xff] }
 0x189   : > { %1086 = vst.msk [vmem:[#allocation2 + $0x1] ss:$8 sm:$0x3] %vm4168_vm6, %v1083_v26  ;;  %1110 = vst.msk [vmem:[#allocation2 + $0x3] ss:$8 sm:$0x3] %vm4168_vm6, %v1107_v4  ;;  %v1136_v48 = vrot.slane %v1129_v6, %v4156_v43 }
 0x18a   : > { %v1160_v54 = vrot.slane %v1153_v7, %v4156_v43  ;;  %v1180_v12 = vcombine.low %v1176_v8, %v1177_v2  ;;  %v1204_v13 = vcombine.high %v1176_v8, %v1177_v2  ;;  %v1230_v15 = vrot.slane %v1049_v10, 1  ;;  %v3045_v3 = vld [vmem:[%s5279_s3 + $0x380] sm:$0xff]  ;;  %v3044_v4 = vld [vmem:[%s5279_s3 + $0x378] sm:$0xff]  ;;  %v3083_v6 = vld [vmem:[%s5279_s3 + $0x490] sm:$0xff] }
 0x18b   : > { %v1235_v16 = vmax.f32 %v1050_v17, %v1231_v11  ;;  %1139 = vst.msk [vmem:[#allocation2 + $0x4] ss:$8 sm:$0x3] %vm4168_vm6, %v1136_v48  ;;  %v1141_v38 = vcombine.high %v1136_v48, %v1136_v48  ;;  %v3084_v17 = vld [vmem:[%s5279_s3 + $0x498] sm:$0xff]  ;;  %v3082_v8 = vld [vmem:[%s5279_s3 + $0x488] sm:$0xff] }
 0x18c   : > { %1163 = vst.msk [vmem:[#allocation2 + $0x6] ss:$8 sm:$0x3] %vm4168_vm6, %v1160_v54  ;;  %v1165_v46 = vcombine.high %v1160_v54, %v1160_v54  ;;  %v1187_v19 = vrot.slane %v1180_v12, %v4156_v43  ;;  %v1211_v20 = vrot.slane %v1204_v13, %v4156_v43  ;;  %v1234_v1 = vmax.f32 %v1049_v10, %v1230_v15  ;;  %v3043_v10 = vld [vmem:[%s5279_s3 + $0x370] sm:$0xff]  ;;  %v3042_v48 = vld [vmem:[%s5279_s3 + $0x368] sm:$0xff]  ;;  %v3081_v54 = vld [vmem:[%s5279_s3 + $0x480] sm:$0xff] }
 0x18d   : > { %1144 = vst.msk [vmem:[#allocation2 + $0x5] ss:$8 sm:$0x3] %vm4168_vm6, %v1141_v38  ;;  %v3041_v13 = vld [vmem:[%s5279_s3 + $0x360] sm:$0xff]  ;;  %v3080_v15 = vld [vmem:[%s5279_s3 + $0x478] sm:$0xff]  ;;  %v3079_v38 = vld [vmem:[%s5279_s3 + $0x470] sm:$0xff] }
 0x18e   : > { %1168 = vst.msk [vmem:[#allocation2 + $0x7] ss:$8 sm:$0x3] %vm4168_vm6, %v1165_v46  ;;  %v1194_v21 = vrot.slane %v1187_v19, %v4156_v43  ;;  %v1218_v22 = vrot.slane %v1211_v20, %v4156_v43  ;;  %v1238_v24 = vcombine.low %v1234_v1, %v1235_v16  ;;  %v3040_v16 = vld [vmem:[%s5279_s3 + $0x358] sm:$0xff]  ;;  %v3039_v46 = vld [vmem:[%s5279_s3 + $0x350] sm:$0xff]  ;;  %v3078_v19 = vld [vmem:[%s5279_s3 + $0x468] sm:$0xff] }
 0x18f   : > { %v3038_v20 = vld [vmem:[%s5279_s3 + $0x348] sm:$0xff]  ;;  %v3077_v1 = vld [vmem:[%s5279_s3 + $0x460] sm:$0xff] }
 0x190   : > { %1197 = vst.msk [vmem:[#allocation2 + $0x10] ss:$8 sm:$0x3] %vm4168_vm6, %v1194_v21  ;;  %v1199_v25 = vcombine.high %v1194_v21, %v1194_v21  ;;  %1221 = vst.msk [vmem:[#allocation2 + $0x12] ss:$8 sm:$0x3] %vm4168_vm6, %v1218_v22  ;;  %v1223_v30 = vcombine.high %v1218_v22, %v1218_v22  ;;  %v1245_v32 = vrot.slane %v1238_v24, %v4156_v43 }
 0x191   : > { %v3037_v21 = vld [vmem:[%s5279_s3 + $0x340] sm:$0xff]  ;;  %v3076_v22 = vld [vmem:[%s5279_s3 + $0x458] sm:$0xff] }
 0x192   : > { %1202 = vst.msk [vmem:[#allocation2 + $0x11] ss:$8 sm:$0x3] %vm4168_vm6, %v1199_v25  ;;  %1226 = vst.msk [vmem:[#allocation2 + $0x13] ss:$8 sm:$0x3] %vm4168_vm6, %v1223_v30  ;;  %v1252_v33 = vrot.slane %v1245_v32, %v4156_v43 }
 0x193   : > { %v3036_v24 = vld [vmem:[%s5279_s3 + $0x338] sm:$0xff]  ;;  %v3075_v25 = vld [vmem:[%s5279_s3 + $0x450] sm:$0xff]  ;;  %v3074_v32 = vld [vmem:[%s5279_s3 + $0x448] sm:$0xff] }
 0x194   : > { %1255 = vst.msk [vmem:[#allocation2 + $0x14] ss:$8 sm:$0x3] %vm4168_vm6, %v1252_v33  ;;  %v1257_v34 = vcombine.high %v1252_v33, %v1252_v33  ;;  %v3035_v30 = vld [vmem:[%s5279_s3 + $0x330] sm:$0xff]  ;;  %v3034_v33 = vld [vmem:[%s5279_s3 + $0x328] sm:$0xff] }
 0x195   : > { %v1263_v28 = vld [vmem:[#allocation2 + $0x8] sm:$0xff]  ;;  %v1262_v36 = vld [vmem:[#allocation2] sm:$0xff] }
 0x196   : > { %3015 = vmatprep.mubr.msk.f32.mxu0 %vm1367_vm7, %v1263_v28  ;;  %1260 = vst.msk [vmem:[#allocation2 + $0x15] ss:$8 sm:$0x3] %vm4168_vm6, %v1257_v34  ;;  %v1309_v29 = vld [vmem:[#allocation2 + $0x8] sm:$0xfe]  ;;  %v3073_v34 = vld [vmem:[%s5279_s3 + $0x440] sm:$0xff] }
 0x197   : > { %1532 = vmatmul.mubr.f32.vlgmr.msra.gmra.mxu0 %v1262_v36  ;;  %v1308_v45 = vld [vmem:[#allocation2] sm:$0xfe]  ;;  %v1695_v0 = vld [vmem:[#allocation2 + $0x8] sm:$0xf8]  ;;  %v1362_v52 = vrot.slane %v1309_v29, 1  ;;  %v3072_v36 = vld [vmem:[%s5279_s3 + $0x438] sm:$0xff] }
 0x198   : > { %1764 = vmatpush1.msra.mxu0 %v3093_v37  ;;  %v1359_v44 = vrot.slane %v1308_v45, 1  ;;  %v1748_v47 = vrot.slane %v1695_v0, 3  ;;  %v1545_v26 = vld [vmem:[#allocation2 + $0x8] sm:$0xfc]  ;;  %v3033_v28 = vld [vmem:[%s5279_s3 + $0x320] sm:$0xff]  ;;  %v3032_v37 = vld [vmem:[%s5279_s3 + $0x318] sm:$0xff] }
 0x199   : > { %1765 = vmatprep.subr.mxu0 %v3092_v40  ;;  %v1265_v35 = vld [vmem:[#allocation2 + $0x18] sm:$0x3]  ;;  %v1264_v49 = vld [vmem:[#allocation2 + $0x10] sm:$0x3]  ;;  %v1598_v11 = vrot.slane %v1545_v26, 2  ;;  %v3030_v29 = vld [vmem:[%s5279_s3 + $0x308] sm:$0xff] }
 0x19a   : > { %1766 = vmatpush1.msra.mxu0 %v3091_v41  ;;  %v1311_v14 = vld [vmem:[#allocation2 + $0x18] sm:$0x7]  ;;  %3016 = vmatprep.mubr.msk.f32.mxu0 %vm1367_vm7, %v1265_v35  ;;  %v1310_v5 = vld [vmem:[#allocation2 + $0x10] sm:$0x7]  ;;  %v3029_v45 = vld [vmem:[%s5279_s3 + $0x300] sm:$0xff] }
 0x19b   : > { %1767 = vmatprep.subr.mxu0 %v3090_v42  ;;  %v1363_v53 = vrot.slane %v1311_v14, 1  ;;  %1538 = vmatmul.mubr.f32.gmra.mxu0 %v1264_v49  ;;  %v1360_v55 = vrot.slane %v1310_v5, 1  ;;  %v4240_v31 = vld [vmem:[#allocation2 + $0x18] sm:$0x1f]  ;;  %v3071_v40 = vld [vmem:[%s5279_s3 + $0x430] sm:$0xff]  ;;  %v3070_v42 = vld [vmem:[%s5279_s3 + $0x428] sm:$0xff] }
 0x19c   : > { %1768 = vmatpush1.msra.mxu0 %v3089_v50  ;;  %v1749_v27 = vrot.slane %v4240_v31, 3  ;;  %v4255_v61 = vld [vmem:[#allocation2 + $0x18] sm:$0xf]  ;;  %v3031_v41 = vld [vmem:[%s5279_s3 + $0x310] sm:$0xff]  ;;  %v3069_v50 = vld [vmem:[%s5279_s3 + $0x420] sm:$0xff] }
 0x19d   : > { %v1364_v56 = vsel %vm409_vm0, %v1362_v52, %v1363_v53  ;;  %1769 = vmatprep.subr.mxu0 %v3088_v51  ;;  %v1361_v9 = vsel %vm409_vm0, %v1359_v44, %v1360_v55  ;;  %v1599_v7 = vrot.slane %v4255_v61, 2  ;;  %v3068_v0 = vld [vmem:[%s5279_s3 + $0x418] sm:$0xff]  ;;  %v3067_v49 = vld [vmem:[%s5279_s3 + $0x410] sm:$0xff]  ;;  %v3066_v51 = vld [vmem:[%s5279_s3 + $0x408] sm:$0xff] }
 0x19e   : > { %3011 = vmatprep.mubr.msk.f32.mxu1 %vm1367_vm7, %v1364_v56  ;;  %1770 = vmatpush1.msra.mxu0 %v3087_v23  ;;  %v1750_v2 = vsel %vm743_vm3, %v1748_v47, %v1749_v27  ;;  %v3028_v35 = vld [vmem:[%s5279_s3 + $0x2f8] sm:$0xff]  ;;  %v3027_v14 = vld [vmem:[%s5279_s3 + $0x2f0] sm:$0xff]  ;;  %v3026_v52 = vld [vmem:[%s5279_s3 + $0x2e8] sm:$0xff] }
 0x19f   : > { %1443 = vmatmul.mubr.f32.vlgmr.msra.gmra.mxu1 %v1361_v9  ;;  %1771 = vmatprep.subr.mxu0 %v3086_v59  ;;  %v1600_v12 = vsel %vm621_vm2, %v1598_v11, %v1599_v7  ;;  %v3025_v5 = vld [vmem:[%s5279_s3 + $0x2e0] sm:$0xff]  ;;  %v3064_v23 = vld [vmem:[%s5279_s3 + $0x3f8] sm:$0xff]  ;;  %v3023_v56 = vld [vmem:[%s5279_s3 + $0x2d0] sm:$0xff] }
 0x1a0   : > { %1614 = vmatpush1.msra.mxu1 %v3047_v58  ;;  %3012 = vmatprep.mubr.msk.f32.mxu1 %vm1367_vm7, %v1363_v53  ;;  %v3065_v53 = vld [vmem:[%s5279_s3 + $0x400] sm:$0xff]  ;;  %v3024_v44 = vld [vmem:[%s5279_s3 + $0x2d8] sm:$0xff]  ;;  %v3022_v59 = vld [vmem:[%s5279_s3 + $0x2c8] sm:$0xff] }
 0x1a1   : > { %1615 = vmatprep.subr.mxu1 %v3046_v60  ;;  %1772 = vmatpush1.msra.mxu0 %v3085_v63  ;;  %v3104_v58 = vld [vmem:[%s5279_s3 + $0x538] sm:$0x7f]  ;;  %v3103_v47 = vld [vmem:[%s5279_s3 + $0x530] sm:$0x7f]  ;;  %v3021_v9 = vld [vmem:[%s5279_s3 + $0x2c0] sm:$0xff] }
 0x1a2   : > { %3107 = vmatprep.mubr.msk.f32.mxu0 %vm1367_vm7, %v1750_v2  ;;  %1616 = vmatpush1.msra.mxu1 %v3045_v3  ;;  %v3102_v60 = vld [vmem:[%s5279_s3 + $0x528] sm:$0xff]  ;;  %v3020_v63 = vld [vmem:[%s5279_s3 + $0x2b8] sm:$0xff]  ;;  %v3101_v2 = vld [vmem:[%s5279_s3 + $0x520] sm:$0xff] }
 0x1a3   : > { %1773 = vmatprep.subr.mxu0 %v3084_v17  ;;  %1617 = vmatprep.subr.mxu1 %v3044_v4  ;;  %v3019_v3 = vld [vmem:[%s5279_s3 + $0x2b0] sm:$0xff]  ;;  %v3100_v17 = vld [vmem:[%s5279_s3 + $0x518] sm:$0xff]  ;;  %v3018_v26 = vld [vmem:[%s5279_s3 + $0x2a8] sm:$0xff] }
 0x1a4   : > { %1774 = vmatpush1.msra.mxu0 %v3083_v6  ;;  %1449 = vmatmul.mubr.f32.gmra.mxu1 %v1360_v55  ;;  %v3063_v55 = vld [vmem:[%s5279_s3 + $0x3f0] sm:$0xff]  ;;  %v3058_v11 = vld [vmem:[%s5279_s3 + $0x3e8] sm:$0x7f]  ;;  %v3049_v31 = vld [vmem:[%s5279_s3 + $0x3a0] sm:$0xff] }
 0x1a5   : > { %1775 = vmatprep.subr.mxu0 %v3082_v8  ;;  %1618 = vmatpush1.msra.mxu1 %v3043_v10  ;;  %v3099_v4 = vld [vmem:[%s5279_s3 + $0x510] sm:$0xff]  ;;  %v3017_v8 = vld [vmem:[%s5279_s3 + $0x2a0] sm:$0xff]  ;;  %v3098_v10 = vld [vmem:[%s5279_s3 + $0x508] sm:$0xff] }
 0x1a6   : > { %3061 = vmatprep.mubr.msk.f32.mxu1 %vm1367_vm7, %v1600_v12  ;;  %1619 = vmatprep.subr.mxu1 %v3042_v48  ;;  %v1696_v6 = vld [vmem:[#allocation2 + $0x10] sm:$0x1f]  ;;  %v3097_v48 = vld [vmem:[%s5279_s3 + $0x500] sm:$0xff] }
 0x1a7   : > { %1776 = vmatpush1.msra.mxu0 %v3081_v54  ;;  %1620 = vmatpush1.msra.mxu1 %v3041_v13  ;;  %v1694_v54 = vld [vmem:[#allocation2] sm:$0xf8]  ;;  %v3096_v13 = vld [vmem:[%s5279_s3 + $0x4f8] sm:$0xff] }
 0x1a8   : > { %1777 = vmatprep.subr.mxu0 %v3080_v15  ;;  %1621 = vmatprep.subr.mxu1 %v3040_v16  ;;  %v3057_v12 = vld [vmem:[%s5279_s3 + $0x3e0] sm:$0x7f]  ;;  %v1746_v15 = vrot.slane %v1696_v6, 3  ;;  %v3056_v16 = vld [vmem:[%s5279_s3 + $0x3d8] sm:$0xff]  ;;  %v3111_v6 = vld [vmem:[%s5279_s3 + $0x550] sm:$0xff] }
 0x1a9   : > { %1778 = vmatpush1.msra.mxu0 %v3079_v38  ;;  %1622 = vmatpush1.msra.mxu1 %v3039_v46  ;;  %v3095_v38 = vld [vmem:[%s5279_s3 + $0x4f0] sm:$0xff] }
 0x1aa   : > { %1779 = vmatprep.subr.mxu0 %v3078_v19  ;;  %1623 = vmatprep.subr.mxu1 %v3038_v20  ;;  %v3055_v46 = vld [vmem:[%s5279_s3 + $0x3d0] sm:$0xff]  ;;  %v1745_v19 = vrot.slane %v1694_v54, 3  ;;  %v3054_v20 = vld [vmem:[%s5279_s3 + $0x3c8] sm:$0xff]  ;;  %v3148_v54 = vld [vmem:[%s5279_s3 + $0x678] sm:$0xff] }
 0x1ab   : > { %1780 = vmatpush1.msra.mxu0 %v3077_v1  ;;  %1624 = vmatpush1.msra.mxu1 %v3037_v21  ;;  %v3053_v21 = vld [vmem:[%s5279_s3 + $0x3c0] sm:$0xff] }
 0x1ac   : > { %1781 = vmatprep.subr.mxu0 %v3076_v22  ;;  %1625 = vmatprep.subr.mxu1 %v3036_v24  ;;  %v1747_v1 = vsel %vm743_vm3, %v1745_v19, %v1746_v15  ;;  %v1546_v22 = vld [vmem:[#allocation2 + $0x10] sm:$0xf]  ;;  %v3052_v24 = vld [vmem:[%s5279_s3 + $0x3b8] sm:$0xff]  ;;  %v1844_v19 = vld [vmem:[#allocation2] sm:$0xf0] }
 0x1ad   : > { %1782 = vmatpush1.msra.mxu0 %v3075_v25  ;;  %1626 = vmatpush1.msra.mxu1 %v3035_v30  ;;  %v3051_v25 = vld [vmem:[%s5279_s3 + $0x3b0] sm:$0xff]  ;;  %v1544_v30 = vld [vmem:[#allocation2] sm:$0xfc] }
 0x1ae   : > { %1783 = vmatprep.subr.mxu0 %v3074_v32  ;;  %1627 = vmatprep.subr.mxu1 %v3034_v33  ;;  %v3050_v32 = vld [vmem:[%s5279_s3 + $0x3a8] sm:$0xff]  ;;  %v1596_v33 = vrot.slane %v1546_v22, 2  ;;  %v1895_v22 = vrot.slane %v1844_v19, 4  ;;  %v2129_v19 = vld [vmem:[%s5281_s5 + $0x20] sm:$0xff] }
 0x1af   : > { %1784 = vmatpush1.msra.mxu0 %v3073_v34  ;;  %1628 = vmatpush1.msra.mxu1 %v3033_v28  ;;  %v3140_v34 = vld [vmem:[%s5279_s3 + $0x638] sm:$0xff] }
 0x1b0   : > { %1785 = vmatprep.subr.mxu0 %v3072_v36  ;;  %1629 = vmatprep.subr.mxu1 %v3032_v37  ;;  %v4495_v28 = vld [vmem:[#allocation2 + $0x18] sm:$0x3f]  ;;  %v3139_v36 = vld [vmem:[%s5279_s3 + $0x630] sm:$0xff] }
 0x1b1   : > { %1786 = vmatpush1.msra.mxu0 %v3071_v40  ;;  %1630 = vmatpush1.msra.mxu1 %v3031_v41  ;;  %v3138_v40 = vld [vmem:[%s5279_s3 + $0x628] sm:$0xff] }
 0x1b2   : > { %1787 = vmatprep.subr.mxu0 %v3070_v42  ;;  %1631 = vmatprep.subr.mxu1 %v3030_v29  ;;  %v1845_v41 = vld [vmem:[#allocation2 + $0x8] sm:$0xf0]  ;;  %v3137_v42 = vld [vmem:[%s5279_s3 + $0x620] sm:$0xff]  ;;  %v1899_v29 = vrot.slane %v4495_v28, 4 }
 0x1b3   : > { %1788 = vmatpush1.msra.mxu0 %v3069_v50  ;;  %1632 = vmatpush1.msra.mxu1 %v3029_v45  ;;  %v3136_v50 = vld [vmem:[%s5279_s3 + $0x618] sm:$0xff]  ;;  %v3135_v45 = vld [vmem:[%s5279_s3 + $0x610] sm:$0xff]  ;;  %v3167_v28 = vld [vmem:[%s5281_s5 + $0x100] sm:$0xff] }
 0x1b4   : > { %1789 = vmatprep.subr.mxu0 %v3068_v0  ;;  %1633 = vmatprep.subr.mxu1 %v3028_v35  ;;  %v1898_v0 = vrot.slane %v1845_v41, 4  ;;  %v3134_v35 = vld [vmem:[%s5279_s3 + $0x608] sm:$0xff]  ;;  %v3165_v41 = vld [vmem:[%s5281_s5 + $0xf0] sm:$0xff] }
 0x1b5   : > { %1790 = vmatpush1.msra.mxu0 %v3067_v49  ;;  %1634 = vmatpush1.msra.mxu1 %v3027_v14  ;;  %v3132_v49 = vld [vmem:[%s5279_s3 + $0x5f8] sm:$0xff]  ;;  %v3131_v14 = vld [vmem:[%s5279_s3 + $0x5f0] sm:$0xff] }
 0x1b6   : > { %1791 = vmatprep.subr.mxu0 %v3066_v51  ;;  %1635 = vmatprep.subr.mxu1 %v3026_v52  ;;  %v1900_v61 = vsel %vm865_vm4, %v1898_v0, %v1899_v29  ;;  %v3130_v51 = vld [vmem:[%s5279_s3 + $0x5e8] sm:$0xff]  ;;  %v3129_v52 = vld [vmem:[%s5279_s3 + $0x5e0] sm:$0xff] }
 0x1b7   : > { %1792 = vmatpush1.msra.mxu0 %v3065_v53  ;;  %1636 = vmatpush1.msra.mxu1 %v3025_v5  ;;  %v3128_v53 = vld [vmem:[%s5279_s3 + $0x5d8] sm:$0xff]  ;;  %v3127_v5 = vld [vmem:[%s5279_s3 + $0x5d0] sm:$0xff] }
 0x1b8   : > { %1793 = vmatprep.subr.mxu0 %v3064_v23  ;;  %1637 = vmatprep.subr.mxu1 %v3024_v44  ;;  %v3126_v23 = vld [vmem:[%s5279_s3 + $0x5c8] sm:$0xff]  ;;  %v3125_v44 = vld [vmem:[%s5279_s3 + $0x5c0] sm:$0xff] }
 0x1b9   : > { %1794 = vmatpush1.msra.mxu0 %v3063_v55  ;;  %1638 = vmatpush1.msra.mxu1 %v3023_v56  ;;  %v3124_v55 = vld [vmem:[%s5279_s3 + $0x5b8] sm:$0xff]  ;;  %v3123_v56 = vld [vmem:[%s5279_s3 + $0x5b0] sm:$0xff] }
 0x1ba   : > { %3105 = vmatprep.subr.msk.mxu0 %vm409_vm0, %v3104_v58  ;;  %1639 = vmatprep.subr.mxu1 %v3022_v59  ;;  %v3122_v58 = vld [vmem:[%s5279_s3 + $0x5a8] sm:$0xff]  ;;  %v3121_v59 = vld [vmem:[%s5279_s3 + $0x5a0] sm:$0xff] }
 0x1bb   : > { %3106 = vmatpush2.msk.msra.mxu0 %vm409_vm0, %v3103_v47  ;;  %1640 = vmatpush1.msra.mxu1 %v3021_v9  ;;  %v3120_v47 = vld [vmem:[%s5279_s3 + $0x598] sm:$0xff]  ;;  %v3119_v9 = vld [vmem:[%s5279_s3 + $0x590] sm:$0xff] }
 0x1bc   : > { %1819 = vmatprep.subr.mxu0 %v3102_v60  ;;  %1641 = vmatprep.subr.mxu1 %v3020_v63  ;;  %v3118_v60 = vld [vmem:[%s5279_s3 + $0x588] sm:$0xff]  ;;  %v3117_v63 = vld [vmem:[%s5279_s3 + $0x580] sm:$0xff] }
 0x1bd   : > { %1820 = vmatpush2.msra.mxu0 %v3101_v2  ;;  %1642 = vmatpush1.msra.mxu1 %v3019_v3  ;;  %v3116_v2 = vld [vmem:[%s5279_s3 + $0x578] sm:$0xff]  ;;  %v3115_v3 = vld [vmem:[%s5279_s3 + $0x570] sm:$0xff] }
 0x1be   : > { %1821 = vmatprep.subr.mxu0 %v3100_v17  ;;  %1643 = vmatprep.subr.mxu1 %v3018_v26  ;;  %v3114_v17 = vld [vmem:[%s5279_s3 + $0x568] sm:$0xff]  ;;  %v3113_v26 = vld [vmem:[%s5279_s3 + $0x560] sm:$0xff] }
 0x1bf   : > { %1822 = vmatpush2.msra.mxu0 %v3099_v4  ;;  %1644 = vmatpush1.msra.mxu1 %v3017_v8  ;;  %v3112_v4 = vld [vmem:[%s5279_s3 + $0x558] sm:$0xff]  ;;  %v3110_v8 = vld [vmem:[%s5279_s3 + $0x548] sm:$0xff] }
 0x1c0   : > { %1823 = vmatprep.subr.mxu0 %v3098_v10  ;;  %3059 = vmatprep.subr.msk.mxu1 %vm409_vm0, %v3058_v11  ;;  %v3109_v10 = vld [vmem:[%s5279_s3 + $0x540] sm:$0xff]  ;;  %v3150_v11 = vld [vmem:[%s5279_s3 + $0x688] sm:$0x7f] }
 0x1c1   : > { %1824 = vmatpush2.msra.mxu0 %v3097_v48  ;;  %3060 = vmatpush2.msk.msra.mxu1 %vm409_vm0, %v3057_v12  ;;  %v3149_v48 = vld [vmem:[%s5279_s3 + $0x680] sm:$0x7f]  ;;  %v3147_v12 = vld [vmem:[%s5279_s3 + $0x670] sm:$0xff] }
 0x1c2   : > { %1825 = vmatprep.subr.mxu0 %v3096_v13  ;;  %1669 = vmatprep.subr.mxu1 %v3056_v16  ;;  %v3146_v13 = vld [vmem:[%s5279_s3 + $0x668] sm:$0xff]  ;;  %v1846_v16 = vld [vmem:[#allocation2 + $0x10] sm:$0x3f] }
 0x1c3   : > { %1826 = vmatpush2.msra.mxu0 %v3095_v38  ;;  %1670 = vmatpush2.msra.mxu1 %v3055_v46  ;;  %v3144_v38 = vld [vmem:[%s5279_s3 + $0x658] sm:$0xff]  ;;  %v3143_v46 = vld [vmem:[%s5279_s3 + $0x650] sm:$0xff] }
 0x1c4   : > { %1828 = vmatmul.mubr.f32.vlgmr.msra.gmra.mxu0 %v1747_v1  ;;  %1671 = vmatprep.subr.mxu1 %v3054_v20  ;;  %v3142_v20 = vld [vmem:[%s5279_s3 + $0x648] sm:$0xff]  ;;  %v1896_v1 = vrot.slane %v1846_v16, 4 }
 0x1c5   : > { %3108 = vmatprep.mubr.msk.f32.mxu0 %vm1367_vm7, %v1749_v27  ;;  %1672 = vmatpush2.msra.mxu1 %v3053_v21  ;;  %v1595_v27 = vrot.slane %v1544_v30, 2  ;;  %v3141_v21 = vld [vmem:[%s5279_s3 + $0x640] sm:$0xff]  ;;  %v3170_v30 = vld [vmem:[%s5281_s5 + $0x118] sm:$0xff] }
 0x1c6   : > { %2183 = vmatprep.subr.mxu0 %v3466_v18  ;;  %1673 = vmatprep.subr.mxu1 %v3052_v24  ;;  %v1897_v24 = vsel %vm865_vm4, %v1895_v22, %v1896_v1 }
 0x1c7   : > { %1674 = vmatpush2.msra.mxu1 %v3051_v25  ;;  %v1597_v37 = vsel %vm621_vm2, %v1595_v27, %v1596_v33  ;;  %v2140_v25 = vld [vmem:[%s5281_s5 + $0x78] sm:$0xff]  ;;  %2184 = vmatpush1.msra.mxu0 %v3170_v30  ;;  %v3168_v27 = vld [vmem:[%s5281_s5 + $0x108] sm:$0xff] }
 0x1c8   : > { %1834 = vmatmul.mubr.f32.gmra.mxu0 %v1746_v15  ;;  %1675 = vmatprep.subr.mxu1 %v3050_v32  ;;  %v3145_v15 = vld [vmem:[%s5279_s3 + $0x660] sm:$0xff]  ;;  %v2139_v32 = vld [vmem:[%s5281_s5 + $0x70] sm:$0xff]  ;;  %v2128_v30 = vld [vmem:[%s5281_s5 + $0x18] sm:$0xff] }
 0x1c9   : > { %1676 = vmatpush2.msra.mxu1 %v3049_v31  ;;  %2185 = vmatprep.subr.mxu0 %v3466_v18  ;;  %v2138_v31 = vld [vmem:[%s5281_s5 + $0x68] sm:$0xff] }
 0x1ca   : > { %1678 = vmatmul.mubr.f32.vlgmr.msra.gmra.mxu1 %v1597_v37  ;;  %1913 = vmatprep.subr.mxu1 %v3140_v34  ;;  %v2137_v34 = vld [vmem:[%s5281_s5 + $0x60] sm:$0xff]  ;;  %v3166_v37 = vld [vmem:[%s5281_s5 + $0xf8] sm:$0xff] }
 0x1cb   : > { %3062 = vmatprep.mubr.msk.f32.mxu1 %vm1367_vm7, %v1599_v7  ;;  %1914 = vmatpush1.msra.mxu1 %v3139_v36  ;;  %v3133_v7 = vld [vmem:[%s5279_s3 + $0x600] sm:$0xff]  ;;  %v2136_v36 = vld [vmem:[%s5281_s5 + $0x58] sm:$0xff] }
 0x1cc   : > { %1915 = vmatprep.subr.mxu1 %v3138_v40  ;;  %v2135_v40 = vld [vmem:[%s5281_s5 + $0x50] sm:$0xff] }
 0x1cd   : > { %1916 = vmatpush1.msra.mxu1 %v3137_v42  ;;  %v2134_v42 = vld [vmem:[%s5281_s5 + $0x48] sm:$0xff] }
 0x1ce   : > { %1684 = vmatmul.mubr.f32.gmra.mxu1 %v1596_v33  ;;  %1917 = vmatprep.subr.mxu1 %v3136_v50  ;;  %v3169_v33 = vld [vmem:[%s5281_s5 + $0x110] sm:$0xff] }
 0x1cf   : > { %1918 = vmatpush1.msra.mxu1 %v3135_v45  ;;  %3153 = vmatprep.mubr.msk.f32.mxu1 %vm1367_vm7, %v1900_v61 }
 0x1d0   : > { %1919 = vmatprep.subr.mxu1 %v3134_v35  ;;  %2186 = vmatpush1.msra.mxu0 %v3169_v33 }
 0x1d1   : > { %1920 = vmatpush1.msra.mxu1 %v3133_v7  ;;  %2187 = vmatprep.subr.mxu0 %v3466_v18 }
 0x1d2   : > { %1921 = vmatprep.subr.mxu1 %v3132_v49  ;;  %2188 = vmatpush1.msra.mxu0 %v3168_v27 }
 0x1d3   : > { %1922 = vmatpush1.msra.mxu1 %v3131_v14  ;;  %2189 = vmatprep.subr.mxu0 %v3466_v18 }
 0x1d4   : > { %1923 = vmatprep.subr.mxu1 %v3130_v51  ;;  %2190 = vmatpush1.msra.mxu0 %v3167_v28  ;;  %v3158_v28 = vld [vmem:[%s5281_s5 + $0xb8] sm:$0xff] }
 0x1d5   : > { %1924 = vmatpush1.msra.mxu1 %v3129_v52  ;;  %2191 = vmatprep.subr.mxu0 %v3466_v18 }
 0x1d6   : > { %1925 = vmatprep.subr.mxu1 %v3128_v53  ;;  %2192 = vmatpush1.msra.mxu0 %v3166_v37 }
 0x1d7   : > { %1926 = vmatpush1.msra.mxu1 %v3127_v5  ;;  %2193 = vmatprep.subr.mxu0 %v3466_v18  ;;  %v3164_v5 = vld [vmem:[%s5281_s5 + $0xe8] sm:$0xff] }
 0x1d8   : > { %1927 = vmatprep.subr.mxu1 %v3126_v23  ;;  %2194 = vmatpush1.msra.mxu0 %v3165_v41  ;;  %v2133_v23 = vld [vmem:[%s5281_s5 + $0x40] sm:$0xff] }
 0x1d9   : > { %1928 = vmatpush1.msra.mxu1 %v3125_v44  ;;  %2195 = vmatprep.subr.mxu0 %v3466_v18 }
 0x1da   : > { %1929 = vmatprep.subr.mxu1 %v3124_v55  ;;  %2196 = vmatpush1.msra.mxu0 %v3164_v5  ;;  %v3172_v5 = vld [vmem:[%s5281_s5 + $0x128] sm:$0xff] }
 0x1db   : > { %1930 = vmatpush1.msra.mxu1 %v3123_v56  ;;  %2197 = vmatprep.subr.mxu0 %v3466_v18 }
 0x1dc   : > { %1931 = vmatprep.subr.mxu1 %v3122_v58  ;;  %v1994_v58 = vld [vmem:[%s5280_s4] sm:$0x3] }
 0x1dd   : > { %1932 = vmatpush1.msra.mxu1 %v3121_v59 }
 0x1de   : > { %1933 = vmatprep.subr.mxu1 %v3120_v47  ;;  %v3163_v47 = vld [vmem:[%s5281_s5 + $0xe0] sm:$0xff] }
 0x1df   : > { %1934 = vmatpush1.msra.mxu1 %v3119_v9  ;;  %v2132_v9 = vld [vmem:[%s5281_s5 + $0x38] sm:$0xff]  ;;  %2198 = vmatpush1.msra.mxu0 %v3163_v47 }
 0x1e0   : > { %1935 = vmatprep.subr.mxu1 %v3118_v60  ;;  %2199 = vmatprep.subr.mxu0 %v3466_v18 }
 0x1e1   : > { %1936 = vmatpush1.msra.mxu1 %v3117_v63 }
 0x1e2   : > { %1937 = vmatprep.subr.mxu1 %v3116_v2 }
 0x1e3   : > { %1938 = vmatpush1.msra.mxu1 %v3115_v3  ;;  %v1999_v3 = vrot.slane %v1994_v58, %v3865_v57 }
 0x1e4   : > { %1939 = vmatprep.subr.mxu1 %v3114_v17  ;;  %v3162_v17 = vld [vmem:[%s5281_s5 + $0xd8] sm:$0xff] }
 0x1e5   : > { %1940 = vmatpush1.msra.mxu1 %v3113_v26  ;;  %v2131_v26 = vld [vmem:[%s5281_s5 + $0x30] sm:$0xff]  ;;  %2200 = vmatpush1.msra.mxu0 %v3162_v17 }
 0x1e6   : > { %1941 = vmatprep.subr.mxu1 %v3112_v4  ;;  %2201 = vmatprep.subr.mxu0 %v3466_v18 }
 0x1e7   : > { %1942 = vmatpush1.msra.mxu1 %v3111_v6 }
 0x1e8   : > { %1943 = vmatprep.subr.mxu1 %v3110_v8 }
 0x1e9   : > { %1944 = vmatpush1.msra.mxu1 %v3109_v10 }
 0x1ea   : > { %3151 = vmatprep.subr.msk.mxu1 %vm409_vm0, %v3150_v11 }
 0x1eb   : > { %3152 = vmatpush2.msk.msra.mxu1 %vm409_vm0, %v3149_v48  ;;  %v2003_v48 = vrot.slane %v1994_v58, %v3879_v62 }
 0x1ec   : > { %1969 = vmatprep.subr.mxu1 %v3148_v54  ;;  %v3161_v54 = vld [vmem:[%s5281_s5 + $0xd0] sm:$0xff] }
 0x1ed   : > { %1970 = vmatpush2.msra.mxu1 %v3147_v12  ;;  %v2130_v12 = vld [vmem:[%s5281_s5 + $0x28] sm:$0xff]  ;;  %2202 = vmatpush1.msra.mxu0 %v3161_v54 }
 0x1ee   : > { %1971 = vmatprep.subr.mxu1 %v3146_v13  ;;  %2203 = vmatprep.subr.mxu0 %v3466_v18 }
 0x1ef   : > { %1972 = vmatpush2.msra.mxu1 %v3145_v15 }
 0x1f0   : > { %1973 = vmatprep.subr.mxu1 %v3144_v38 }
 0x1f1   : > { %1974 = vmatpush2.msra.mxu1 %v3143_v46  ;;  %v3160_v46 = vld [vmem:[%s5281_s5 + $0xc8] sm:$0xff] }
 0x1f2   : > { %1975 = vmatprep.subr.mxu1 %v3142_v20  ;;  %2204 = vmatpush1.msra.mxu0 %v3160_v46 }
 0x1f3   : > { %1976 = vmatpush2.msra.mxu1 %v3141_v21  ;;  %2205 = vmatprep.subr.mxu0 %v3466_v18 }
 0x1f4   : > { %1978 = vmatmul.mubr.f32.vlgmr.msra.gmra.mxu1 %v1897_v24  ;;  %2268 = vmatprep.subr.mxu1 %v3466_v18 }
 0x1f5   : > { %3154 = vmatprep.mubr.msk.f32.mxu1 %vm1367_vm7, %v1899_v29  ;;  %2269 = vmatpush1.msra.mxu1 %v2140_v25  ;;  %v3159_v25 = vld [vmem:[%s5281_s5 + $0xc0] sm:$0xff] }
 0x1f6   : > { %2270 = vmatprep.subr.mxu1 %v3466_v18  ;;  %2206 = vmatpush1.msra.mxu0 %v3159_v25  ;;  %v3216_v25 = vld [vmem:[%s5281_s5 + $0x258] sm:$0xff] }
 0x1f7   : > { %2271 = vmatpush1.msra.mxu1 %v2139_v32  ;;  %2207 = vmatprep.subr.mxu0 %v3466_v18 }
 0x1f8   : > { %1984 = vmatmul.mubr.f32.gmra.mxu1 %v1896_v1  ;;  %2272 = vmatprep.subr.mxu1 %v3466_v18 }
 0x1f9   : > { %2273 = vmatpush1.msra.mxu1 %v2138_v31  ;;  %2208 = vmatpush1.msra.mxu0 %v3158_v28  ;;  %v3194_v28 = vld [vmem:[%s5281_s5 + $0x1b8] sm:$0xff] }
 0x1fa   : > { %2274 = vmatprep.subr.mxu1 %v3466_v18  ;;  %2209 = vmatprep.subr.mxu0 %v3466_v18 }
 0x1fb   : > { %2275 = vmatpush1.msra.mxu1 %v2137_v34 }
 0x1fc   : > { %2276 = vmatprep.subr.mxu1 %v3466_v18 }
 0x1fd   : > { %2277 = vmatpush1.msra.mxu1 %v2136_v36  ;;  %v2127_v36 = vld [vmem:[%s5281_s5 + $0x10] sm:$0xff] }
 0x1fe   : > { %2278 = vmatprep.subr.mxu1 %v3466_v18 }
 0x1ff   : > { %2279 = vmatpush1.msra.mxu1 %v2135_v40 }
 0x200   : > { %2280 = vmatprep.subr.mxu1 %v3466_v18 }
 0x201   : > { %2281 = vmatpush1.msra.mxu1 %v2134_v42  ;;  %v3157_v42 = vld [vmem:[%s5281_s5 + $0xb0] sm:$0xff] }
 0x202   : > { %2282 = vmatprep.subr.mxu1 %v3466_v18  ;;  %2210 = vmatpush1.msra.mxu0 %v3157_v42  ;;  %v3213_v42 = vld [vmem:[%s5281_s5 + $0x240] sm:$0xff] }
 0x203   : > { %2283 = vmatpush1.msra.mxu1 %v2133_v23  ;;  %2211 = vmatprep.subr.mxu0 %v3466_v18  ;;  %v2141_v23 = vld [vmem:[%s5281_s5 + $0x80] sm:$0xff] }
 0x204   : > { %2284 = vmatprep.subr.mxu1 %v3466_v18 }
 0x205   : > { %2285 = vmatpush1.msra.mxu1 %v2132_v9 }
 0x206   : > { %2286 = vmatprep.subr.mxu1 %v3466_v18 }
 0x207   : > { %2287 = vmatpush1.msra.mxu1 %v2131_v26 }
 0x208   : > { %2288 = vmatprep.subr.mxu1 %v3466_v18 }
 0x209   : > { %2289 = vmatpush1.msra.mxu1 %v2130_v12 }
 0x20a   : > { %2290 = vmatprep.subr.mxu1 %v3466_v18 }
 0x20b   : > { %2291 = vmatpush1.msra.mxu1 %v2129_v19 }
 0x20c   : > { %2292 = vmatprep.subr.mxu1 %v3466_v18 }
 0x20d   : > { %2293 = vmatpush1.msra.mxu1 %v2128_v30 }
 0x20e   : > { %2294 = vmatprep.subr.mxu1 %v3466_v18 }
 0x20f   : > { %2295 = vmatpush1.msra.mxu1 %v2127_v36 }
 0x210   : > { %2296 = vmatprep.subr.mxu1 %v3466_v18 }
 0x257   : > { %v1533_v45 = vpop.f32.mrf.mxu0 }
 0x259   : > { %v1535_v35 = vpop.f32.mrf.mxu0 }
 0x25b   : > { %v1539_v7 = vpop.f32.mrf.mxu0 }
 0x25d   : > { %v1541_v14 = vpop.f32.mrf.mxu0 }
 0x25f   : > { %v1444_v29 = vpop.f32.mrf.mxu1 }
 0x260   : > { %v1534_v53 = vadd.f32 %v1533_v45, %v1444_v29  ;;  %v2126_v29 = vld [vmem:[%s5281_s5 + $0x8] sm:$0xff] }
 0x261   : > { %v1446_v50 = vpop.f32.mrf.mxu1  ;;  %2297 = vmatpush1.msra.mxu1 %v2126_v29  ;;  %v3191_v29 = vld [vmem:[%s5281_s5 + $0x1a0] sm:$0xff] }
 0x262   : > { %v1536_v55 = vadd.f32 %v1535_v35, %v1446_v50  ;;  %v2125_v35 = vld [vmem:[%s5281_s5] sm:$0xff]  ;;  %2298 = vmatprep.subr.mxu1 %v3466_v18 }
 0x263   : > { %2299 = vmatpush1.msra.mxu1 %v2125_v35  ;;  %v3189_v35 = vld [vmem:[%s5281_s5 + $0x190] sm:$0xff] }
 0x264   : > { %v1450_v0 = vpop.f32.mrf.mxu1  ;;  %2324 = vmatprep.subr.mxu1 %v3466_v18 }
 0x265   : > { %v1540_v60 = vadd.f32 %v1539_v7, %v1450_v0  ;;  %v3156_v0 = vld [vmem:[%s5281_s5 + $0xa8] sm:$0xff]  ;;  %v3155_v7 = vld [vmem:[%s5281_s5 + $0xa0] sm:$0xff] }
 0x266   : > { %v1452_v61 = vpop.f32.mrf.mxu1  ;;  %2212 = vmatpush1.msra.mxu0 %v3156_v0  ;;  %v3211_v0 = vld [vmem:[%s5281_s5 + $0x230] sm:$0xff] }
 0x267   : > { %v1542_v4 = vadd.f32 %v1541_v14, %v1452_v61  ;;  %2213 = vmatprep.subr.mxu0 %v3466_v18  ;;  %v3174_v14 = vld [vmem:[%s5281_s5 + $0x138] sm:$0x7f] }
 0x268   : > { %2214 = vmatpush1.msra.mxu0 %v3155_v7  ;;  %v3188_v7 = vld [vmem:[%s5281_s5 + $0x188] sm:$0xff] }
 0x269   : > { %2239 = vmatprep.subr.mxu0 %v3466_v18 }
 0x26a   : > { %3175 = vmatpush2.msk.msra.mxu0 %vm409_vm0, %v3174_v14  ;;  %v3187_v14 = vld [vmem:[%s5281_s5 + $0x180] sm:$0xff] }
 0x26b   : > { %2241 = vmatprep.subr.mxu0 %v3466_v18 }
 0x284   : > { %v1829_v52 = vpop.f32.mrf.mxu0 }
 0x286   : > { %v1831_v59 = vpop.f32.mrf.mxu0 }
 0x288   : > { %v1835_v10 = vpop.f32.mrf.mxu0 }
 0x28a   : > { %v1679_v49 = vpop.f32.mrf.mxu1  ;;  %v1837_v22 = vpop.f32.mrf.mxu0 }
 0x28b   : > { %v1690_v56 = vadd.f32 %v1679_v49, %v1534_v53  ;;  %v2144_v49 = vld [vmem:[%s5281_s5 + $0x98] sm:$0x7f]  ;;  %v2142_v53 = vld [vmem:[%s5281_s5 + $0x88] sm:$0xff] }
 0x28c   : > { %v1681_v51 = vpop.f32.mrf.mxu1  ;;  %3177 = vmatpush2.msk.msra.mxu1 %vm409_vm0, %v2144_v49  ;;  %v3209_v49 = vld [vmem:[%s5281_s5 + $0x220] sm:$0xff] }
 0x28d   : > { %v1691_v63 = vadd.f32 %v1681_v51, %v1536_v55  ;;  %v1840_v8 = vadd.f32 %v1829_v52, %v1690_v56  ;;  %v2143_v51 = vld [vmem:[%s5281_s5 + $0x90] sm:$0xff]  ;;  %2326 = vmatprep.subr.mxu1 %v3466_v18 }
 0x28e   : > { %v1685_v44 = vpop.f32.mrf.mxu1  ;;  %v3173_v52 = vld [vmem:[%s5281_s5 + $0x130] sm:$0xff]  ;;  %2327 = vmatpush2.msra.mxu1 %v2143_v51  ;;  %v3208_v51 = vld [vmem:[%s5281_s5 + $0x218] sm:$0xff] }
 0x28f   : > { %v1692_v6 = vadd.f32 %v1685_v44, %v1540_v60  ;;  %v1841_v16 = vadd.f32 %v1831_v59, %v1691_v63  ;;  %2328 = vmatprep.subr.mxu1 %v3466_v18  ;;  %2242 = vmatpush2.msra.mxu0 %v3173_v52  ;;  %v3171_v44 = vld [vmem:[%s5281_s5 + $0x120] sm:$0xff]  ;;  %v3186_v52 = vld [vmem:[%s5281_s5 + $0x178] sm:$0xff] }
 0x290   : > { %v1687_v2 = vpop.f32.mrf.mxu1  ;;  %2329 = vmatpush2.msra.mxu1 %v2142_v53  ;;  %2243 = vmatprep.subr.mxu0 %v3466_v18  ;;  %v3207_v53 = vld [vmem:[%s5281_s5 + $0x210] sm:$0xff] }
 0x291   : > { %v1693_v13 = vadd.f32 %v1687_v2, %v1542_v4  ;;  %v1842_v21 = vadd.f32 %v1835_v10, %v1692_v6  ;;  %2330 = vmatprep.subr.mxu1 %v3466_v18  ;;  %2244 = vmatpush2.msra.mxu0 %v3172_v5  ;;  %v3185_v5 = vld [vmem:[%s5281_s5 + $0x170] sm:$0xff] }
 0x292   : > { %2331 = vmatpush2.msra.mxu1 %v2141_v23  ;;  %2245 = vmatprep.subr.mxu0 %v3466_v18  ;;  %v3206_v23 = vld [vmem:[%s5281_s5 + $0x208] sm:$0xff] }
 0x293   : > { %v1843_v27 = vadd.f32 %v1837_v22, %v1693_v13  ;;  %2483 = vmatprep.subr.mxu1 %v3466_v18  ;;  %2246 = vmatpush2.msra.mxu0 %v3171_v44  ;;  %v3184_v44 = vld [vmem:[%s5281_s5 + $0x168] sm:$0xff] }
 0x294   : > { %2375 = vmatprep.subr.mxu0 %v3466_v18 }
 0x2b4   : > { %v1979_v11 = vpop.f32.mrf.mxu1 }
 0x2b5   : > { %v1990_v15 = vadd.f32 %v1979_v11, %v1840_v8 }
 0x2b6   : > { %v1981_v38 = vpop.f32.mrf.mxu1 }
 0x2b7   : > { %v4731_v20 = vadd.f32 %v1999_v3, %v1990_v15  ;;  %v1991_v1 = vadd.f32 %v1981_v38, %v1841_v16 }
 0x2b8   : > { %v1985_v24 = vpop.f32.mrf.mxu1 }
 0x2b9   : > { %v2010_v32 = vmax.f32 %v4731_v20, 0.0  ;;  %v4742_v33 = vadd.f32 %v2003_v48, %v1991_v1  ;;  %v1992_v31 = vadd.f32 %v1985_v24, %v1842_v21 }
 0x2ba   : > { %v1987_v34 = vpop.f32.mrf.mxu1 }
 0x2bb   : > { %v2011_v37 = vmax.f32 %v4742_v33, 0.0  ;;  %v4753_v40 = vadd.f32 %v1999_v3, %v1992_v31  ;;  %v1993_v41 = vadd.f32 %v1987_v34, %v1843_v27  ;;  %2018 = vrot.lane.b32.xlu0 %v2010_v32, %s3467_s26  ;;  %v3215_v34 = vld [vmem:[%s5281_s5 + $0x250] sm:$0xff] }
 0x2bd   : > { %v2012_v50 = vmax.f32 %v4753_v40, 0.0  ;;  %v2009_v45 = vadd.f32 %v2003_v48, %v1993_v41  ;;  %2020 = vrot.lane.b32.xlu1 %v2011_v37, %s3467_s26  ;;  %v3214_v40 = vld [vmem:[%s5281_s5 + $0x248] sm:$0xff] }
 0x2be   : > { %v3192_v41 = vld [vmem:[%s5281_s5 + $0x1a8] sm:$0xff] }
 0x2bf   : > { %v2013_v61 = vmax.f32 %v2009_v45, 0.0  ;;  %2022 = vrot.lane.b32.xlu0 %v2012_v50, %s3467_s26  ;;  %v3190_v45 = vld [vmem:[%s5281_s5 + $0x198] sm:$0xff] }
 0x2c1   : > { %2024 = vrot.lane.b32.xlu1 %v2013_v61, %s3467_s26  ;;  %s377_s26 = sand.u32 1, %s3456_s18  }
 0x2c2   : > { %s378_s24 = scalar_lea.vmem [#allocation4], %s377_s26  ;;  %s2842_s13 = scalar_lea.sflag [#allocation5], %s377_s26 }
 0x2c3   : > { %s2854_s25 = sshll.u32 %s378_s24, 4  ;;  %s2855_s25 = int_to_ptr.vmem [resolvable:$true] %s2854_s25 }
 0x2c4   : > { %s3404_s14 = scalar_lea.vmem %s2855_s25, 16  ;;  %p3411_p0 = scmp.lt.s32.totalorder %s2855_s25, %s3409_s21 }
 0x2c5   : > { %p3405_p11 = scmp.ne.s32.totalorder %s2855_s25, %s3404_s14  ;;  %p3412_p1 = scmp.lt.s32.totalorder %s3410_s16, %s3404_s14 }
 0x2c7   : > { %p3406_p12 = pnand %p3405_p11, %p3569_p5  ;;  %p3413_p2 = por %p3412_p1, %p3411_p0 }
 0x2c9   : > { %p3407_p13 = pneg %p3406_p12 }
 0x2cb   : > { %p3414_p3 = pnand %p3413_p2, %p3407_p13 }
 0x32d   : > { %v2019_v55 = vpop.permute.xlu0 %2018 }
 0x32f   : > { %v2021_v56 = vpop.permute.xlu1 %2020 }
 0x330   : > { %v2026_v58 = vsel %vm1030_vm5, %v2019_v55, %v2021_v56  ;;  %v2033_v59 = vmax.f32 %v2011_v37, %v2021_v56  ;;  %v3193_v37 = vld [vmem:[%s5281_s5 + $0x1b0] sm:$0xff]  ;;  %v3205_v55 = vld [vmem:[%s5281_s5 + $0x200] sm:$0xff] }
 0x331   : > { %v2032_v47 = vmax.f32 %v2010_v32, %v2026_v58  ;;  %v2023_v63 = vpop.permute.xlu0 %2022  ;;  %v3183_v56 = vld [vmem:[%s5281_s5 + $0x160] sm:$0xff]  ;;  %v3204_v58 = vld [vmem:[%s5281_s5 + $0x1f8] sm:$0xff] }
 0x332   : > { %v2039_v9 = vrot.slane %v2033_v59, 1 }
 0x333   : > { %v2038_v60 = vrot.slane %v2032_v47, 1  ;;  %v2025_v2 = vpop.permute.xlu1 %2024 }
 0x334   : > { %v2043_v3 = vmax.f32 %v2033_v59, %v2039_v9  ;;  %v2027_v17 = vsel %vm1030_vm5, %v2023_v63, %v2025_v2  ;;  %v2035_v26 = vmax.f32 %v2013_v61, %v2025_v2  ;;  %v3210_v61 = vld [vmem:[%s5281_s5 + $0x228] sm:$0xff]  ;;  %v3182_v59 = vld [vmem:[%s5281_s5 + $0x158] sm:$0xff]  ;;  %v3181_v9 = vld [vmem:[%s5281_s5 + $0x150] sm:$0xff] }
 0x335   : > { %v2042_v4 = vmax.f32 %v2032_v47, %v2038_v60  ;;  %v2034_v6 = vmax.f32 %v2012_v50, %v2027_v17  ;;  %v3212_v50 = vld [vmem:[%s5281_s5 + $0x238] sm:$0xff]  ;;  %v3203_v47 = vld [vmem:[%s5281_s5 + $0x1f0] sm:$0xff]  ;;  %v3202_v60 = vld [vmem:[%s5281_s5 + $0x1e8] sm:$0xff] }
 0x336   : > { %v2098_v8 = vrot.slane %v2035_v26, 1  ;;  %v3180_v63 = vld [vmem:[%s5281_s5 + $0x148] sm:$0xff]  ;;  %v3201_v2 = vld [vmem:[%s5281_s5 + $0x1e0] sm:$0xff]  ;;  %v3220_v17 = vld [vmem:[%s5281_s5 + $0x278] sm:$0x7f] }
 0x337   : > { %v2046_v10 = vcombine.low %v2042_v4, %v2043_v3  ;;  %v2071_v11 = vcombine.high %v2042_v4, %v2043_v3  ;;  %v2097_v48 = vrot.slane %v2034_v6, 1  ;;  %v3179_v3 = vld [vmem:[%s5281_s5 + $0x140] sm:$0xff]  ;;  %v3219_v4 = vld [vmem:[%s5281_s5 + $0x270] sm:$0xff] }
 0x338   : > { %v2102_v54 = vmax.f32 %v2035_v26, %v2098_v8  ;;  %v3198_v26 = vld [vmem:[%s5281_s5 + $0x1d8] sm:$0x7f]  ;;  %v3218_v8 = vld [vmem:[%s5281_s5 + $0x268] sm:$0xff] }
 0x339   : > { %v2053_v12 = vrot.slane %v2046_v10, %v4156_v43  ;;  %v2078_v13 = vrot.slane %v2071_v11, %v4156_v43  ;;  %v2101_v15 = vmax.f32 %v2034_v6, %v2097_v48  ;;  %v3197_v6 = vld [vmem:[%s5281_s5 + $0x1d0] sm:$0xff]  ;;  %v3196_v10 = vld [vmem:[%s5281_s5 + $0x1c8] sm:$0xff]  ;;  %v3217_v11 = vld [vmem:[%s5281_s5 + $0x260] sm:$0xff] }
 0x33b   : > { %v2060_v16 = vrot.slane %v2053_v12, %v4156_v43  ;;  %v2085_v38 = vrot.slane %v2078_v13, %v4156_v43  ;;  %v2105_v46 = vcombine.low %v2101_v15, %v2102_v54  ;;  %v3195_v54 = vld [vmem:[%s5281_s5 + $0x1c0] sm:$0xff]  ;;  %v3238_v15 = vld [vmem:[%s5281_s5 + $0x2f8] sm:$0xff] }
 0x33d   : > { %2064 = vst.msk [vmem:[#allocation3] ss:$8 sm:$0x3] %vm2062_vm8, %v2060_v16  ;;  %v2066_v19 = vcombine.high %v2060_v16, %v2060_v16  ;;  %2088 = vst.msk [vmem:[#allocation3 + $0x2] ss:$8 sm:$0x3] %vm2062_vm8, %v2085_v38  ;;  %v2090_v20 = vcombine.high %v2085_v38, %v2085_v38  ;;  %v2112_v1 = vrot.slane %v2105_v46, %v4156_v43 }
 0x33e   : > { %v3237_v38 = vld [vmem:[%s5281_s5 + $0x2f0] sm:$0xff]  ;;  %v3236_v46 = vld [vmem:[%s5281_s5 + $0x2e8] sm:$0xff] }
 0x33f   : > { %2069 = vst.msk [vmem:[#allocation3 + $0x1] ss:$8 sm:$0x3] %vm2062_vm8, %v2066_v19  ;;  %2093 = vst.msk [vmem:[#allocation3 + $0x3] ss:$8 sm:$0x3] %vm2062_vm8, %v2090_v20  ;;  %v2119_v21 = vrot.slane %v2112_v1, %v4156_v43 }
 0x340   : > { %v3234_v19 = vld [vmem:[%s5281_s5 + $0x2d8] sm:$0xff]  ;;  %v3233_v20 = vld [vmem:[%s5281_s5 + $0x2d0] sm:$0xff]  ;;  %v3232_v1 = vld [vmem:[%s5281_s5 + $0x2c8] sm:$0xff] }
 0x341   : > { %2122 = vst.msk [vmem:[#allocation3 + $0x4] ss:$8 sm:$0x3] %vm2062_vm8, %v2119_v21  ;;  %v3231_v21 = vld [vmem:[%s5281_s5 + $0x2c0] sm:$0xff] }
 0x344   : > { %v2124_v22 = vld [vmem:[#allocation3] ss:$8 sm:$0x3]  ;;  %v4841_v27 = vld [vmem:[#allocation3 + $0x2] ss:$8 sm:$0x3] }
 0x345   : > { %v2257_v39 = vrot.slane %v2124_v22, %v3865_v57  ;;  %v2261_v24 = vrot.slane %v2124_v22, %v3879_v62  ;;  %v2368_v36 = vrot.slane %v4841_v27, %v3879_v62  ;;  %v2364_v13 = vrot.slane %v4841_v27, %v3865_v57  ;;  %v3230_v22 = vld [vmem:[%s5281_s5 + $0x2b8] sm:$0xff]  ;;  %v3241_v27 = vld [vmem:[%s5281_s5 + $0x310] sm:$0xff] }
 0x346   : > { %v2145_v30 = vld [vmem:[#allocation3 + $0x1] ss:$8 sm:$0x3]  ;;  %v4834_v32 = vld [vmem:[#allocation3 + $0x3] ss:$8 sm:$0x3] }
 0x347   : > { %3178 = vmatprep.mubr.msk.f32.mxu1 %vm2177_vm9, %v2261_v24  ;;  %v2171_v33 = vrot.slane %v2145_v30, %v3865_v57  ;;  %v2175_v43 = vrot.slane %v2145_v30, %v3879_v62  ;;  %v2476_v31 = vrot.slane %v4834_v32, %v3879_v62  ;;  %v2472_v48 = vrot.slane %v4834_v32, %v3865_v57  ;;  %v3228_v24 = vld [vmem:[%s5281_s5 + $0x2a8] sm:$0xff]  ;;  %v3226_v30 = vld [vmem:[%s5281_s5 + $0x298] sm:$0xff]  ;;  %v3225_v32 = vld [vmem:[%s5281_s5 + $0x290] sm:$0xff] }
 0x348   : > { %2333 = vmatmul.mubr.f32.vlgmr.msra.gmra.mxu1 %v2257_v39  ;;  %v5006_v12 = vld [vmem:[#allocation3 + $0x4] ss:$8 sm:$0x3]  ;;  %v3229_v39 = vld [vmem:[%s5281_s5 + $0x2b0] sm:$0xff] }
 0x349   : > { %2484 = vmatpush1.msra.mxu1 %v3216_v25  ;;  %3176 = vmatprep.mubr.msk.f32.mxu0 %vm2177_vm9, %v2175_v43  ;;  %v2584_v16 = vrot.slane %v5006_v12, %v3879_v62  ;;  %v3235_v62 = vld [vmem:[%s5281_s5 + $0x2e0] sm:$0xff] }
 0x34a   : > { %2485 = vmatprep.subr.mxu1 %v3466_v18  ;;  %3222 = vmatprep.mubr.msk.f32.mxu1 %vm2177_vm9, %v2476_v31  ;;  %v3227_v25 = vld [vmem:[%s5281_s5 + $0x2a0] sm:$0xff]  ;;  %v3242_v31 = vld [vmem:[%s5281_s5 + $0x318] sm:$0x7f] }
 0x34b   : > { %2248 = vmatmul.mubr.f32.vlgmr.msra.gmra.mxu0 %v2171_v33  ;;  %2486 = vmatpush1.msra.mxu1 %v3215_v34  ;;  %v3224_v33 = vld [vmem:[%s5281_s5 + $0x288] sm:$0xff]  ;;  %v3223_v43 = vld [vmem:[%s5281_s5 + $0x280] sm:$0xff] }
 0x34c   : > { %2376 = vmatpush1.msra.mxu0 %v3194_v28  ;;  %3200 = vmatprep.mubr.msk.f32.mxu0 %vm2177_vm9, %v2368_v36  ;;  %v3240_v34 = vld [vmem:[%s5281_s5 + $0x308] sm:$0xff]  ;;  %v3239_v28 = vld [vmem:[%s5281_s5 + $0x300] sm:$0xff]  ;;  %v2580_v36 = vrot.slane %v5006_v12, %v3865_v57 }
 0x34d   : > { %2377 = vmatprep.subr.mxu0 %v3466_v18  ;;  %2487 = vmatprep.subr.mxu1 %v3466_v18  ;;  %v2677_v57 = vld [vmem:[%s5283_s7 + $0x60] sm:$0xff] }
 0x34e   : > { %2378 = vmatpush1.msra.mxu0 %v3193_v37  ;;  %2488 = vmatpush1.msra.mxu1 %v3214_v40  ;;  %v2680_v37 = vld [vmem:[%s5283_s7 + $0x78] sm:$0xff]  ;;  %v2679_v40 = vld [vmem:[%s5283_s7 + $0x70] sm:$0xff] }
 0x34f   : > { %2379 = vmatprep.subr.mxu0 %v3466_v18  ;;  %2489 = vmatprep.subr.mxu1 %v3466_v18 }
 0x350   : > { %2380 = vmatpush1.msra.mxu0 %v3192_v41  ;;  %2490 = vmatpush1.msra.mxu1 %v3213_v42  ;;  %v2678_v41 = vld [vmem:[%s5283_s7 + $0x68] sm:$0xff]  ;;  %v2676_v42 = vld [vmem:[%s5283_s7 + $0x58] sm:$0xff] }
 0x351   : > { %2381 = vmatprep.subr.mxu0 %v3466_v18  ;;  %2491 = vmatprep.subr.mxu1 %v3466_v18 }
 0x352   : > { %2382 = vmatpush1.msra.mxu0 %v3191_v29  ;;  %2492 = vmatpush1.msra.mxu1 %v3212_v50  ;;  %v2675_v29 = vld [vmem:[%s5283_s7 + $0x50] sm:$0xff]  ;;  %v2674_v50 = vld [vmem:[%s5283_s7 + $0x48] sm:$0xff] }
 0x353   : > { %2383 = vmatprep.subr.mxu0 %v3466_v18  ;;  %2493 = vmatprep.subr.mxu1 %v3466_v18 }
 0x354   : > { %2384 = vmatpush1.msra.mxu0 %v3190_v45  ;;  %2494 = vmatpush1.msra.mxu1 %v3211_v0  ;;  %v2673_v45 = vld [vmem:[%s5283_s7 + $0x40] sm:$0xff]  ;;  %v2672_v0 = vld [vmem:[%s5283_s7 + $0x38] sm:$0xff] }
 0x355   : > { %2385 = vmatprep.subr.mxu0 %v3466_v18  ;;  %2495 = vmatprep.subr.mxu1 %v3466_v18 }
 0x356   : > { %2386 = vmatpush1.msra.mxu0 %v3189_v35  ;;  %2496 = vmatpush1.msra.mxu1 %v3210_v61  ;;  %v2671_v35 = vld [vmem:[%s5283_s7 + $0x30] sm:$0xff]  ;;  %v2670_v61 = vld [vmem:[%s5283_s7 + $0x28] sm:$0xff] }
 0x357   : > { %2387 = vmatprep.subr.mxu0 %v3466_v18  ;;  %2497 = vmatprep.subr.mxu1 %v3466_v18 }
 0x358   : > { %2388 = vmatpush1.msra.mxu0 %v3188_v7  ;;  %2498 = vmatpush1.msra.mxu1 %v3209_v49  ;;  %v2669_v7 = vld [vmem:[%s5283_s7 + $0x20] sm:$0xff]  ;;  %v2668_v49 = vld [vmem:[%s5283_s7 + $0x18] sm:$0xff] }
 0x359   : > { %2389 = vmatprep.subr.mxu0 %v3466_v18  ;;  %2499 = vmatprep.subr.mxu1 %v3466_v18 }
 0x35a   : > { %2390 = vmatpush1.msra.mxu0 %v3187_v14  ;;  %2500 = vmatpush1.msra.mxu1 %v3208_v51  ;;  %v2667_v14 = vld [vmem:[%s5283_s7 + $0x10] sm:$0xff]  ;;  %v2666_v51 = vld [vmem:[%s5283_s7 + $0x8] sm:$0xff] }
 0x35b   : > { %2391 = vmatprep.subr.mxu0 %v3466_v18  ;;  %2501 = vmatprep.subr.mxu1 %v3466_v18 }
 0x35c   : > { %2392 = vmatpush1.msra.mxu0 %v3186_v52  ;;  %2502 = vmatpush1.msra.mxu1 %v3207_v53  ;;  %v2665_v52 = vld [vmem:[%s5283_s7] sm:$0xff]  ;;  %v2768_v53 = vld [vmem:[%s5285_s9 + $0x78] sm:$0xff] }
 0x35d   : > { %2393 = vmatprep.subr.mxu0 %v3466_v18  ;;  %2503 = vmatprep.subr.mxu1 %v3466_v18 }
 0x35e   : > { %2394 = vmatpush1.msra.mxu0 %v3185_v5  ;;  %2504 = vmatpush1.msra.mxu1 %v3206_v23  ;;  %v2767_v5 = vld [vmem:[%s5285_s9 + $0x70] sm:$0xff]  ;;  %v2766_v23 = vld [vmem:[%s5285_s9 + $0x68] sm:$0xff] }
 0x35f   : > { %2395 = vmatprep.subr.mxu0 %v3466_v18  ;;  %2505 = vmatprep.subr.mxu1 %v3466_v18 }
 0x360   : > { %2396 = vmatpush1.msra.mxu0 %v3184_v44  ;;  %2506 = vmatpush1.msra.mxu1 %v3205_v55  ;;  %v2765_v44 = vld [vmem:[%s5285_s9 + $0x60] sm:$0xff]  ;;  %v2764_v55 = vld [vmem:[%s5285_s9 + $0x58] sm:$0xff] }
 0x361   : > { %2397 = vmatprep.subr.mxu0 %v3466_v18  ;;  %2507 = vmatprep.subr.mxu1 %v3466_v18 }
 0x362   : > { %2398 = vmatpush1.msra.mxu0 %v3183_v56  ;;  %2508 = vmatpush1.msra.mxu1 %v3204_v58  ;;  %v2763_v56 = vld [vmem:[%s5285_s9 + $0x50] sm:$0xff]  ;;  %v2762_v58 = vld [vmem:[%s5285_s9 + $0x48] sm:$0xff] }
 0x363   : > { %2399 = vmatprep.subr.mxu0 %v3466_v18  ;;  %2509 = vmatprep.subr.mxu1 %v3466_v18 }
 0x364   : > { %2400 = vmatpush1.msra.mxu0 %v3182_v59  ;;  %2510 = vmatpush1.msra.mxu1 %v3203_v47  ;;  %v2761_v59 = vld [vmem:[%s5285_s9 + $0x40] sm:$0xff]  ;;  %v2760_v47 = vld [vmem:[%s5285_s9 + $0x38] sm:$0xff] }
 0x365   : > { %2401 = vmatprep.subr.mxu0 %v3466_v18  ;;  %2511 = vmatprep.subr.mxu1 %v3466_v18 }
 0x366   : > { %2402 = vmatpush1.msra.mxu0 %v3181_v9  ;;  %2512 = vmatpush1.msra.mxu1 %v3202_v60  ;;  %v2759_v9 = vld [vmem:[%s5285_s9 + $0x30] sm:$0xff]  ;;  %v2758_v60 = vld [vmem:[%s5285_s9 + $0x28] sm:$0xff] }
 0x367   : > { %2403 = vmatprep.subr.mxu0 %v3466_v18  ;;  %2513 = vmatprep.subr.mxu1 %v3466_v18 }
 0x368   : > { %2404 = vmatpush1.msra.mxu0 %v3180_v63  ;;  %2514 = vmatpush1.msra.mxu1 %v3201_v2  ;;  %v2757_v63 = vld [vmem:[%s5285_s9 + $0x20] sm:$0xff]  ;;  %v2756_v2 = vld [vmem:[%s5285_s9 + $0x18] sm:$0xff] }
 0x369   : > { %2405 = vmatprep.subr.mxu0 %v3466_v18  ;;  %2539 = vmatprep.subr.mxu1 %v3466_v18 }
 0x36a   : > { %2406 = vmatpush1.msra.mxu0 %v3179_v3  ;;  %3221 = vmatpush2.msk.msra.mxu1 %vm409_vm0, %v3220_v17 }
 0x36b   : > { %2431 = vmatprep.subr.mxu0 %v3466_v18  ;;  %2541 = vmatprep.subr.mxu1 %v3466_v18 }
 0x36c   : > { %3199 = vmatpush2.msk.msra.mxu0 %vm409_vm0, %v3198_v26  ;;  %2542 = vmatpush2.msra.mxu1 %v3219_v4 }
 0x36d   : > { %2433 = vmatprep.subr.mxu0 %v3466_v18  ;;  %2543 = vmatprep.subr.mxu1 %v3466_v18 }
 0x36e   : > { %2434 = vmatpush2.msra.mxu0 %v3197_v6  ;;  %2544 = vmatpush2.msra.mxu1 %v3218_v8 }
 0x36f   : > { %2435 = vmatprep.subr.mxu0 %v3466_v18  ;;  %2545 = vmatprep.subr.mxu1 %v3466_v18 }
 0x370   : > { %2436 = vmatpush2.msra.mxu0 %v3196_v10  ;;  %2546 = vmatpush2.msra.mxu1 %v3217_v11 }
 0x371   : > { %2437 = vmatprep.subr.mxu0 %v3466_v18  ;;  %2548 = vmatmul.mubr.f32.vlgmr.msra.gmra.mxu1 %v2472_v48 }
 0x372   : > { %2438 = vmatpush2.msra.mxu0 %v3195_v54  ;;  %3283 = vmatprep.subr.mxu1 %v3466_v18 }
 0x373   : > { %2440 = vmatmul.mubr.f32.vlgmr.msra.gmra.mxu0 %v2364_v13  ;;  %2591 = vmatprep.subr.mxu0 %v3466_v18 }
 0x374   : > { %2592 = vmatpush1.msra.mxu0 %v3238_v15  ;;  %3244 = vmatprep.mubr.msk.f32.mxu0 %vm2177_vm9, %v2584_v16  ;;  %v2662_v15 = vld [vmem:[%s5282_s6] sm:$0x1] }
 0x375   : > { %2593 = vmatprep.subr.mxu0 %v3466_v18  ;;  %3284 = vmatpush3.msra.mxu1 %v2680_v37 }
 0x376   : > { %2594 = vmatpush1.msra.mxu0 %v3237_v38  ;;  %3285 = vmatprep.subr.mxu1 %v3466_v18 }
 0x377   : > { %2595 = vmatprep.subr.mxu0 %v3466_v18  ;;  %3286 = vmatpush3.msra.mxu1 %v2679_v40 }
 0x378   : > { %2596 = vmatpush1.msra.mxu0 %v3236_v46  ;;  %3287 = vmatprep.subr.mxu1 %v3466_v18 }
 0x379   : > { %2597 = vmatprep.subr.mxu0 %v3466_v18  ;;  %3288 = vmatpush3.msra.mxu1 %v2678_v41 }
 0x37a   : > { %2598 = vmatpush1.msra.mxu0 %v3235_v62  ;;  %3289 = vmatprep.subr.mxu1 %v3466_v18 }
 0x37b   : > { %2599 = vmatprep.subr.mxu0 %v3466_v18  ;;  %3290 = vmatpush3.msra.mxu1 %v2677_v57 }
 0x37c   : > { %2600 = vmatpush1.msra.mxu0 %v3234_v19  ;;  %3291 = vmatprep.subr.mxu1 %v3466_v18  ;;  %v2755_v19 = vld [vmem:[%s5285_s9 + $0x10] sm:$0xff] }
 0x37d   : > { %2601 = vmatprep.subr.mxu0 %v3466_v18  ;;  %3292 = vmatpush3.msra.mxu1 %v2676_v42 }
 0x37e   : > { %2602 = vmatpush1.msra.mxu0 %v3233_v20  ;;  %3293 = vmatprep.subr.mxu1 %v3466_v18  ;;  %v2754_v20 = vld [vmem:[%s5285_s9 + $0x8] sm:$0xff] }
 0x37f   : > { %2603 = vmatprep.subr.mxu0 %v3466_v18  ;;  %3294 = vmatpush3.msra.mxu1 %v2675_v29 }
 0x380   : > { %2604 = vmatpush1.msra.mxu0 %v3232_v1  ;;  %3295 = vmatprep.subr.mxu1 %v3466_v18  ;;  %v2753_v1 = vld [vmem:[%s5285_s9] sm:$0xff] }
 0x381   : > { %2605 = vmatprep.subr.mxu0 %v3466_v18  ;;  %3296 = vmatpush3.msra.mxu1 %v2674_v50 }
 0x382   : > { %2606 = vmatpush1.msra.mxu0 %v3231_v21  ;;  %3297 = vmatprep.subr.mxu1 %v3466_v18  ;;  %v2681_v21 = vld [vmem:[%s5284_s8] sm:$0x1] }
 0x383   : > { %2607 = vmatprep.subr.mxu0 %v3466_v18  ;;  %3298 = vmatpush3.msra.mxu1 %v2673_v45 }
 0x384   : > { %2608 = vmatpush1.msra.mxu0 %v3230_v22  ;;  %3299 = vmatprep.subr.mxu1 %v3466_v18 }
 0x385   : > { %2609 = vmatprep.subr.mxu0 %v3466_v18  ;;  %3300 = vmatpush3.msra.mxu1 %v2672_v0 }
 0x386   : > { %2610 = vmatpush1.msra.mxu0 %v3229_v39  ;;  %3301 = vmatprep.subr.mxu1 %v3466_v18 }
 0x387   : > { %2611 = vmatprep.subr.mxu0 %v3466_v18  ;;  %3302 = vmatpush3.msra.mxu1 %v2671_v35 }
 0x388   : > { %2612 = vmatpush1.msra.mxu0 %v3228_v24  ;;  %3303 = vmatprep.subr.mxu1 %v3466_v18 }
 0x389   : > { %2613 = vmatprep.subr.mxu0 %v3466_v18  ;;  %3304 = vmatpush3.msra.mxu1 %v2670_v61 }
 0x38a   : > { %2614 = vmatpush1.msra.mxu0 %v3227_v25  ;;  %3305 = vmatprep.subr.mxu1 %v3466_v18 }
 0x38b   : > { %2615 = vmatprep.subr.mxu0 %v3466_v18  ;;  %3306 = vmatpush3.msra.mxu1 %v2669_v7 }
 0x38c   : > { %2616 = vmatpush1.msra.mxu0 %v3226_v30  ;;  %3307 = vmatprep.subr.mxu1 %v3466_v18 }
 0x38d   : > { %2617 = vmatprep.subr.mxu0 %v3466_v18  ;;  %3308 = vmatpush3.msra.mxu1 %v2668_v49 }
 0x38e   : > { %2618 = vmatpush1.msra.mxu0 %v3225_v32  ;;  %3309 = vmatprep.subr.mxu1 %v3466_v18 }
 0x38f   : > { %2619 = vmatprep.subr.mxu0 %v3466_v18  ;;  %3310 = vmatpush3.msra.mxu1 %v2667_v14 }
 0x390   : > { %2620 = vmatpush1.msra.mxu0 %v3224_v33  ;;  %3311 = vmatprep.subr.mxu1 %v3466_v18 }
 0x391   : > { %2621 = vmatprep.subr.mxu0 %v3466_v18  ;;  %3312 = vmatpush3.msra.mxu1 %v2666_v51 }
 0x392   : > { %2622 = vmatpush1.msra.mxu0 %v3223_v43  ;;  %3313 = vmatprep.subr.mxu1 %v3466_v18 }
 0x393   : > { %2647 = vmatprep.subr.mxu0 %v3466_v18  ;;  %3314 = vmatpush3.msra.mxu1 %v2665_v52 }
 0x394   : > { %3243 = vmatpush2.msk.msra.mxu0 %vm409_vm0, %v3242_v31  ;;  %3315 = vmatprep.mubr.msk.f32.mxu1 %vm3469_vm10, %v3466_v18 }
 0x395   : > { %2649 = vmatprep.subr.mxu0 %v3466_v18 }
 0x396   : > { %2650 = vmatpush2.msra.mxu0 %v3241_v27 }
 0x397   : > { %2651 = vmatprep.subr.mxu0 %v3466_v18 }
 0x398   : > { %2652 = vmatpush2.msra.mxu0 %v3240_v34 }
 0x399   : > { %2653 = vmatprep.subr.mxu0 %v3466_v18 }
 0x39a   : > { %2654 = vmatpush2.msra.mxu0 %v3239_v28 }
 0x39b   : > { %2656 = vmatmul.mubr.f32.vlgmr.msra.gmra.mxu0 %v2580_v36  ;;  %3318 = vmatprep.subr.mxu0 %v3466_v18 }
 0x39c   : > { %3350 = vmatprep.mubr.msk.f32.mxu0 %vm3469_vm10, %v3466_v18  ;;  %3319 = vmatpush3.msra.mxu0 %v2768_v53 }
 0x39d   : > { %3320 = vmatprep.subr.mxu0 %v3466_v18 }
 0x39e   : > { %3321 = vmatpush3.msra.mxu0 %v2767_v5 }
 0x39f   : > { %3322 = vmatprep.subr.mxu0 %v3466_v18 }
 0x3a0   : > { %3323 = vmatpush3.msra.mxu0 %v2766_v23 }
 0x3a1   : > { %3324 = vmatprep.subr.mxu0 %v3466_v18 }
 0x3a2   : > { %3325 = vmatpush3.msra.mxu0 %v2765_v44 }
 0x3a3   : > { %3326 = vmatprep.subr.mxu0 %v3466_v18 }
 0x3a4   : > { %3327 = vmatpush3.msra.mxu0 %v2764_v55 }
 0x3a5   : > { %3328 = vmatprep.subr.mxu0 %v3466_v18 }
 0x3a6   : > { %3329 = vmatpush3.msra.mxu0 %v2763_v56 }
 0x3a7   : > { %3330 = vmatprep.subr.mxu0 %v3466_v18 }
 0x3a8   : > { %3331 = vmatpush3.msra.mxu0 %v2762_v58 }
 0x3a9   : > { %3332 = vmatprep.subr.mxu0 %v3466_v18 }
 0x3aa   : > { %3333 = vmatpush3.msra.mxu0 %v2761_v59 }
 0x3ab   : > { %3334 = vmatprep.subr.mxu0 %v3466_v18 }
 0x3ac   : > { %3335 = vmatpush3.msra.mxu0 %v2760_v47 }
 0x3ad   : > { %3336 = vmatprep.subr.mxu0 %v3466_v18 }
 0x3ae   : > { %3337 = vmatpush3.msra.mxu0 %v2759_v9 }
 0x3af   : > { %3338 = vmatprep.subr.mxu0 %v3466_v18 }
 0x3b0   : > { %3339 = vmatpush3.msra.mxu0 %v2758_v60 }
 0x3b1   : > { %3340 = vmatprep.subr.mxu0 %v3466_v18 }
 0x3b2   : > { %3341 = vmatpush3.msra.mxu0 %v2757_v63 }
 0x3b3   : > { %3342 = vmatprep.subr.mxu0 %v3466_v18 }
 0x3b4   : > { %3343 = vmatpush3.msra.mxu0 %v2756_v2 }
 0x3b5   : > { %3344 = vmatprep.subr.mxu0 %v3466_v18 }
 0x3b6   : > { %3345 = vmatpush3.msra.mxu0 %v2755_v19 }
 0x3b7   : > { %3346 = vmatprep.subr.mxu0 %v3466_v18 }
 0x3b8   : > { %3347 = vmatpush3.msra.mxu0 %v2754_v20 }
 0x3b9   : > { %3348 = vmatprep.subr.mxu0 %v3466_v18  ;;  %v2769_v18 = vld [vmem:[%s5286_s10] sm:$0x1] }
 0x3ba   : > { %3349 = vmatpush3.msra.mxu0 %v2753_v1 }
 0x408   : > { %v2334_v3 = vpop.f32.mrf.mxu1 }
 0x40a   : > { %v2336_v17 = vpop.f32.mrf.mxu1 }
 0x40b   : > { %v2249_v26 = vpop.f32.mrf.mxu0 }
 0x40c   : > { %v2335_v4 = vadd.f32 %v2334_v3, %v2249_v26 }
 0x40d   : > { %v2251_v6 = vpop.f32.mrf.mxu0 }
 0x431   : > { %v2549_v8 = vpop.f32.mrf.mxu1 }
 0x433   : > { %v2441_v10 = vpop.f32.mrf.mxu0  ;;  %v2551_v11 = vpop.f32.mrf.mxu1 }
 0x434   : > { %v2445_v54 = vadd.f32 %v2441_v10, %v2335_v4 }
 0x435   : > { %v2443_v48 = vpop.f32.mrf.mxu0 }
 0x436   : > { %v2553_v12 = vadd.f32 %v2549_v8, %v2445_v54 }
 0x45b   : > { %v2657_v13 = vpop.f32.mrf.mxu0 }
 0x45c   : > { %v2661_v16 = vadd.f32 %v2657_v13, %v2553_v12 }
 0x45d   : > { %v2659_v38 = vpop.f32.mrf.mxu0 }
 0x45e   : > { %v2663_v46 = vadd.f32 %v2662_v15, %v2661_v16 }
 0x460   : > { %v2664_v62 = vmax.f32 %v2663_v46, 0.0 }
 0x462   : > { %3316 = vmatmul.mubr.f32.vlgmr.msra.gmra.mxu1 %v2664_v62 }
 0x522   : > { %v2748_v22 = vpop.f32.mrf.mxu1 }
 0x523   : > { %v2749_v39 = vadd.f32 %v2748_v22, %v2681_v21 }
 0x524   : > { %v3317_v24 = vpop.f32.mrf.mxu1 }
 0x525   : > { %v2752_v25 = vmax.f32 %v2749_v39, 0.0 }
 0x527   : > { %3351 = vmatmul.mubr.f32.vlgmr.msra.gmra.mxu0 %v2752_v25 }
 0x5e7   : > { %v2836_v30 = vpop.f32.mrf.mxu0 }
 0x5e8   : > { %v2837_v32 = vadd.f32 %v2836_v30, %v2769_v18 }
 0x5e9   : > { %v3352_v33 = vpop.f32.mrf.mxu0 }
 0x5ea   : > { %2840 = vst [vmem:[%s378_s24] sm:$0x1] %v2837_v32 }
 0x5eb   : > { %3417 = shalt.err (!%p3414_p3)
}
 0x5ec   : > { %s3418_s22 = scalar_lea.hbm %s5241_s12, 16  ;;  %s3422_s29 = scalar_lea.hbm %s5287_s11, 32 }
 0x5ed   : > { %p3419_p4 = scmp.ne.s32.totalorder %s5241_s12, %s3418_s22  ;;  %p3423_p9 = scmp.lt.s32.totalorder %s5241_s12, %s5287_s11 }
 0x5ee   : > { %p3424_p10 = scmp.lt.s32.totalorder %s3422_s29, %s3418_s22 }
 0x5ef   : > { %p3420_p7 = pnand %p3419_p4, %p3569_p5 }
 0x5f0   : > { %p3425_p11 = por %p3424_p10, %p3423_p9 }
 0x5f1   : > { %p3421_p8 = pneg %p3420_p7 }
 0x5f3   : > { %p3426_p12 = pnand %p3425_p11, %p3421_p8 }
 0x5f5   : > { %3429 = shalt.err (!%p3426_p12)
}
 0x5f6   : > { %3361 = dma.vmem_to_hbm [thread:$0]  (%p3569_p5), %s2855_s25, 16, %s5241_s12, %s2842_s13  }
 0x5f7 PF: > { %p3367_p13 = scmp.ge.s32.totalorder %s3464_s20, 2  ;;  %s2866_s14 = sand.u32 1, %s3452_s17  }
 0x5f8   : > { %s2867_s21 = scalar_lea.sflag [#allocation5], %s2866_s14 }
 0x5f9   : > { %p3364_p0 = pnand %p3367_p13, %p3573_p6 }
 0x5fb   : > { %p3365_p1 = pneg %p3364_p0 }
 0x5fd   : > { %3447 = dma.done.wait (%p3365_p1), %s2867_s21, 16  }
 0x5fe   : > { %3449 = vsyncadd (%p3365_p1), %s2867_s21, 4294967280  ;;  %s5293_s16 = sld [smem:[#allocation7_spill]]  ;;  %p21_p2 = scmp.ge.s32.totalorder %s3556_s23, 4  }
 0x5ff   : > { %s5294_s17 = smov %s3456_s18  ;;  %s5295_s18 = smov %s3460_s19 }
 0x600   : > { %s5297_s20 = smov %s3556_s23  ;;  %23 = sbr.rel (!%p21_p2) target bundleno = 3 (0x3), region = 128 }
 0x604   : > { %s5296_s19 = smov %s5293_s16 }
 0x605   :  { %2871 = vsyncpa [#allocation5], 1 }
 0x606   :  { %2873 = vsyncpa [#allocation5 + $0x1], 1 }

</bundles_post_ra>
